<compile_context>
chip_gen: v7x
topology: tpu7x:2x2x1
jax: 0.10.0
libtpu: 0.0.40
codegen_flags: <defaults>
</compile_context>

<pallas_src>
import jax
import jax.numpy as jnp
from jax.experimental import pallas as pl
from jax.experimental.pallas import tpu as pltpu

INPUT_DIM = 38
HIDDEN_DIM = 500
OUTPUT_DIM = 38

HID_PAD = 512                   # 500 -> 512 (refinement hidden)
SEL_PAD = 256                   # 250 -> 256 (selection hidden)
FUSED_PAD = HID_PAD + SEL_PAD   # 768 fused first layer (refine | select)


def _round_up(v, m):
    return (v + m - 1) // m * m


def _tpu_info():
    try:
        return pltpu.get_tpu_info()
    except Exception:
        return None


def _vmem_capacity_bytes():
    info = _tpu_info()
    if info is not None:
        for attr in ("vmem_capacity_bytes", "vmem_bytes"):
            v = getattr(info, attr, None)
            if v:
                return int(v)
    return 64 << 20  # conservative fallback: v7x per-core VMEM


def _tensorcores_per_chip():
    info = _tpu_info()
    if info is not None:
        for attr in ("num_cores", "core_count", "num_tensorcores",
                     "tensorcores_per_chip"):
            v = getattr(info, attr, None)
            if v:
                return int(v)
    return 1  # conservative fallback: never force a grid split


def _joint_mlp_kernel(
    x_ref,                 # [bm, 38]            input tile (f32)
    wf_ref, bf_ref,        # [38, 768], [1, 768] fused first layer (refine|select)
    w2_ref, b2_ref,        # [512, 512], [1, 512] refinement layer 2
    w3_ref, b3_ref,        # [512, 38],  [1, 38]  refinement layer 3
    ws2_ref, bs2_ref,      # [256, 38],  [1, 38]  selection layer 2
    out_ref,               # [bm, 38]            output tile
):
    cdt = w2_ref.dtype                         # MXU operand dtype (bf16 or f32)
    x32 = x_ref[...].astype(jnp.float32)       # [bm, 38]
    x_c = x32.astype(cdt)

    # ---- fused first layer: one matmul feeds both sub-networks --------------
    h = jnp.dot(x_c, wf_ref[...], preferred_element_type=jnp.float32)
    h = jnp.maximum(h + bf_ref[...], 0.0)      # biases kept in f32
    h1 = h[:, :HID_PAD].astype(cdt)            # refinement hidden 1 [bm, 512]
    s1 = h[:, HID_PAD:].astype(cdt)            # selection hidden    [bm, 256]

    # ---- refinement_net (Dropout = identity in eval mode) -------------------
    h2 = jnp.dot(h1, w2_ref[...], preferred_element_type=jnp.float32)
    h2 = jnp.maximum(h2 + b2_ref[...], 0.0).astype(cdt)
    refinement = (
        jnp.dot(h2, w3_ref[...], preferred_element_type=jnp.float32) + b3_ref[...]
    )                                          # [bm, 38]

    # residual_proj is None (input_dim == output_dim) -> residual = x
    mlp_predictions = refinement + 0.1 * x32

    # ---- selection_net -------------------------------------------------------
    logits = (
        jnp.dot(s1, ws2_ref[...], preferred_element_type=jnp.float32) + bs2_ref[...]
    )                                          # [bm, 38]
    selection_weights = jax.nn.sigmoid(logits)

    adaptive = (1.0 - selection_weights) * x32 + selection_weights * mlp_predictions
    out_ref[...] = adaptive.astype(out_ref.dtype)


def prepare_params(params, dtype=jnp.bfloat16):
    """Pads hidden dims to lane multiples, fuses the first layers, casts the
    weight matrices to `dtype` (bf16 default, f32 for exactness).  Biases stay
    in f32.  Zero padding is numerically exact."""
    def pad2(a, rows, cols):
        return jnp.pad(a, ((0, rows - a.shape[0]), (0, cols - a.shape[1])))

    wf = jnp.concatenate(
        [pad2(params["w1"], INPUT_DIM, HID_PAD),
         pad2(params["ws1"], INPUT_DIM, SEL_PAD)], axis=1)          # [38, 768]
    bf = jnp.concatenate(
        [pad2(params["b1"], 1, HID_PAD),
         pad2(params["bs1"], 1, SEL_PAD)], axis=1)                   # [1, 768]
    w2 = pad2(params["w2"], HID_PAD, HID_PAD)                        # [512, 512]
    b2 = pad2(params["b2"], 1, HID_PAD)                              # [1, 512]
    w3 = pad2(params["w3"], HID_PAD, OUTPUT_DIM)                     # [512, 38]
    b3 = params["b3"]                                                # [1, 38]
    ws2 = pad2(params["ws2"], SEL_PAD, OUTPUT_DIM)                   # [256, 38]
    bs2 = params["bs2"]                                              # [1, 38]

    wf, w2, w3, ws2 = (w.astype(dtype) for w in (wf, w2, w3, ws2))
    bf, b2, b3, bs2 = (b.astype(jnp.float32) for b in (bf, b2, b3, bs2))
    return [wf, bf, w2, b2, w3, b3, ws2, bs2]


def joint_mlp_refinement_forward(x, packed_params, *, block_batch=1024):
    """JointMLPRefinementModel forward as a Pallas TPU kernel.

    Args:
      x: [batch, 38] float32 HRNet predictions.
      packed_params: output of prepare_params().
      block_batch: target batch-tile rows (rounded to x16, clamped to batch
        and to a generation-dependent VMEM-safe maximum).
    Returns:
      [batch, 38] adaptively-selected coordinates.
    """
    batch, in_dim = x.shape
    assert in_dim == INPUT_DIM

    vmem_phys = _vmem_capacity_bytes()
    cores = _tensorcores_per_chip()
    # bm=2048 only on 128 MiB-VMEM parts (v5e/v6e); cap at 1024 on v7x (64 MiB).
    max_bm = 2048 if vmem_phys >= (100 << 20) else 1024

    padded16 = _round_up(batch, 16)
    bm = max(16, min(_round_up(block_batch, 16), padded16, max_bm))

    # Multi-TensorCore parts only: pick a grid-step count that is a multiple of
    # the core count (even megacore split).  Never split on single-core chips.
    if cores > 1 and padded16 >= cores * 128:
        steps = max(pl.cdiv(padded16, bm), cores)
        steps = _round_up(steps, cores)
        bm = max(16, _round_up(pl.cdiv(padded16, steps), 16))

    padded_batch = _round_up(batch, bm)
    grid = (padded_batch // bm,)

    # Pad only the batch axis, and only when needed (no feature-dim pad).
    x_in = x if padded_batch == batch else jnp.pad(
        x, ((0, padded_batch - batch), (0, 0)))

    in_specs = [pl.BlockSpec((bm, INPUT_DIM), lambda i: (i, 0))]
    for p in packed_params:
        # Full tensor resident every step; constant index_map avoids re-DMA.
        in_specs.append(pl.BlockSpec(p.shape, lambda i: (0, 0)))

    # Advisory cost so XLA schedules surrounding ops around the custom call.
    macs_per_row = (INPUT_DIM * FUSED_PAD + HID_PAD * HID_PAD
                    + HID_PAD * OUTPUT_DIM + SEL_PAD * OUTPUT_DIM)
    weight_bytes = sum(int(p.size) * p.dtype.itemsize for p in packed_params)
    cost = pl.CostEstimate(
        flops=int(2 * padded_batch * macs_per_row),
        transcendentals=int(padded_batch * OUTPUT_DIM),
        bytes_accessed=int(4 * padded_batch * (INPUT_DIM + OUTPUT_DIM)
                           + weight_bytes),
    )

    # Explicit scoped-VMEM limit with headroom (v7x physical VMEM is 64 MiB).
    vmem_limit = int(min(max(vmem_phys - (16 << 20), 32 << 20), 100 << 20))

    out = pl.pallas_call(
        _joint_mlp_kernel,
        out_shape=jax.ShapeDtypeStruct((padded_batch, OUTPUT_DIM), x.dtype),
        grid=grid,
        in_specs=in_specs,
        out_specs=pl.BlockSpec((bm, OUTPUT_DIM), lambda i: (i, 0)),
        compiler_params=pltpu.CompilerParams(
            dimension_semantics=("parallel",),
            vmem_limit_bytes=vmem_limit,
        ),
        cost_estimate=cost,
    )(x_in, *packed_params)

    # Padded batch rows carry bias-driven garbage; slice them off (only when
    # the batch was actually padded).
    return out if padded_batch == batch else out[:batch]


def init_params(key):
    """Deterministic PyTorch-style Linear init: U(-1/sqrt(fan_in), +1/sqrt(fan_in)).
    Weights stored as [in, out] (transposed vs torch) so forward is x @ W + b."""
    def linear(key, fan_in, fan_out):
        kw, kb = jax.random.split(key)
        bound = 1.0 / jnp.sqrt(float(fan_in))
        w = jax.random.uniform(kw, (fan_in, fan_out), jnp.float32, -bound, bound)
        b = jax.random.uniform(kb, (1, fan_out), jnp.float32, -bound, bound)
        return w, b

    keys = jax.random.split(key, 5)
    w1, b1 = linear(keys[0], INPUT_DIM, HIDDEN_DIM)
    w2, b2 = linear(keys[1], HIDDEN_DIM, HIDDEN_DIM)
    w3, b3 = linear(keys[2], HIDDEN_DIM, OUTPUT_DIM)
    ws1, bs1 = linear(keys[3], INPUT_DIM, HIDDEN_DIM // 2)
    ws2, bs2 = linear(keys[4], HIDDEN_DIM // 2, OUTPUT_DIM)
    return dict(w1=w1, b1=b1, w2=w2, b2=b2, w3=w3, b3=b3,
                ws1=ws1, bs1=bs1, ws2=ws2, bs2=bs2)


def reference_forward(x, p):
    """Pure-JAX reference mirroring the PyTorch forward (eval mode)."""
    h1 = jnp.maximum(x @ p["w1"] + p["b1"], 0.0)
    h2 = jnp.maximum(h1 @ p["w2"] + p["b2"], 0.0)
    refinement = h2 @ p["w3"] + p["b3"]
    mlp_pred = refinement + 0.1 * x
    s1 = jnp.maximum(x @ p["ws1"] + p["bs1"], 0.0)
    sel = jax.nn.sigmoid(s1 @ p["ws2"] + p["bs2"])
    return (1.0 - sel) * x + sel * mlp_pred


if __name__ == "__main__":
    key = jax.random.PRNGKey(0)
    k_params, k_x = jax.random.split(key)
    params = init_params(k_params)

    # Small deterministic example consistent with the module: [batch=8, 38].
    batch = 8
    x = jax.random.normal(k_x, (batch, INPUT_DIM), jnp.float32)
    ref = reference_forward(x, params)

    # 1) float32 weights: exact vs reference.
    out_f32 = joint_mlp_refinement_forward(x, prepare_params(params, jnp.float32))
    out_f32 = jax.block_until_ready(out_f32)
    assert out_f32.shape == (batch, OUTPUT_DIM)
    assert jnp.allclose(out_f32, ref, atol=1e-4, rtol=1e-4), (
        "Pallas kernel (f32) mismatch vs reference")

    # 2) Default path: bf16 weights/activations, f32 accumulation + f32 biases.
    out_bf16 = joint_mlp_refinement_forward(x, prepare_params(params))
    out_bf16 = jax.block_until_ready(out_bf16)
    assert jnp.allclose(out_bf16, ref, atol=5e-2, rtol=5e-2), (
        "Pallas kernel (bf16) mismatch vs reference")

    # 3) Larger, non-multiple-of-16 batch: exercises batch padding / slicing.
    xb = jax.random.normal(k_x, (200, INPUT_DIM), jnp.float32)
    out_b = joint_mlp_refinement_forward(xb, prepare_params(params, jnp.float32))
    out_b = jax.block_until_ready(out_b)
    assert out_b.shape == (200, OUTPUT_DIM)
    assert jnp.allclose(out_b, reference_forward(xb, params), atol=1e-4, rtol=1e-4), (
        "Pallas kernel (batch-padded) mismatch vs reference")

    # TODO(synk): Dropout(0.1) is modeled as identity (eval mode); a training-mode
    # variant would need pltpu.prng_seed/prng_random_bits masking.
    print("KERNEL_OK")
</pallas_src>

<mosaic_0001>
module attributes {stable_mosaic.version = 11 : i64} {
  func.func @_joint_mlp_kernel(%arg0: i32, %arg1: memref<16x38xf32, #tpu.memory_space<vmem>>, %arg2: memref<38x768xf32, #tpu.memory_space<vmem>>, %arg3: memref<1x768xf32, #tpu.memory_space<vmem>>, %arg4: memref<512x512xf32, #tpu.memory_space<vmem>>, %arg5: memref<1x512xf32, #tpu.memory_space<vmem>>, %arg6: memref<512x38xf32, #tpu.memory_space<vmem>>, %arg7: memref<1x38xf32, #tpu.memory_space<vmem>>, %arg8: memref<256x38xf32, #tpu.memory_space<vmem>>, %arg9: memref<1x38xf32, #tpu.memory_space<vmem>>, %arg10: memref<16x38xf32, #tpu.memory_space<vmem>>) attributes {dimension_semantics = [#tpu.dimension_semantics<parallel>], iteration_bounds = array<i64: 1>, scalar_prefetch = 0 : i64, scratch_operands = 0 : i64, tpu.core_type = #tpu.core_type<tc>, window_params = [{transform_indices = @transform_0, window_bounds = array<i64: 16, 38>}, {pipeline_mode = #tpu.pipeline_mode<synchronous>, transform_indices = @transform_1, window_bounds = array<i64: 38, 768>}, {pipeline_mode = #tpu.pipeline_mode<synchronous>, transform_indices = @transform_2, window_bounds = array<i64: 1, 768>}, {pipeline_mode = #tpu.pipeline_mode<synchronous>, transform_indices = @transform_3, window_bounds = array<i64: 512, 512>}, {pipeline_mode = #tpu.pipeline_mode<synchronous>, transform_indices = @transform_4, window_bounds = array<i64: 1, 512>}, {pipeline_mode = #tpu.pipeline_mode<synchronous>, transform_indices = @transform_5, window_bounds = array<i64: 512, 38>}, {pipeline_mode = #tpu.pipeline_mode<synchronous>, transform_indices = @transform_6, window_bounds = array<i64: 1, 38>}, {pipeline_mode = #tpu.pipeline_mode<synchronous>, transform_indices = @transform_7, window_bounds = array<i64: 256, 38>}, {pipeline_mode = #tpu.pipeline_mode<synchronous>, transform_indices = @transform_8, window_bounds = array<i64: 1, 38>}, {transform_indices = @transform_9, window_bounds = array<i64: 16, 38>}]} {
    %c0 = arith.constant 0 : index
    %c0_0 = arith.constant 0 : index
    %0 = vector.load %arg1[%c0, %c0_0] : memref<16x38xf32, #tpu.memory_space<vmem>>, vector<16x38xf32>
    %c0_1 = arith.constant 0 : index
    %c0_2 = arith.constant 0 : index
    %1 = vector.load %arg2[%c0_1, %c0_2] : memref<38x768xf32, #tpu.memory_space<vmem>>, vector<38x768xf32>
    %cst = arith.constant dense<0.000000e+00> : vector<16x768xf32>
    %2 = tpu.matmul %0, %1, %cst {dimension_numbers = #tpu.dot_dimension_numbers<[1], [0], [0], [1], [0, 0, 1, 1], [], []>} : vector<16x38xf32>, vector<38x768xf32>, vector<16x768xf32> -> vector<16x768xf32>
    %c0_3 = arith.constant 0 : index
    %c0_4 = arith.constant 0 : index
    %3 = vector.load %arg3[%c0_3, %c0_4] : memref<1x768xf32, #tpu.memory_space<vmem>>, vector<1x768xf32>
    %4 = vector.broadcast %3 : vector<1x768xf32> to vector<16x768xf32>
    %5 = arith.addf %2, %4 : vector<16x768xf32>
    %cst_5 = arith.constant 0.000000e+00 : f32
    %6 = vector.broadcast %cst_5 : f32 to vector<16x768xf32>
    %7 = arith.maximumf %5, %6 : vector<16x768xf32>
    %8 = vector.extract_strided_slice %7 {offsets = [0, 0], sizes = [16, 512], strides = [1, 1]} : vector<16x768xf32> to vector<16x512xf32>
    %9 = vector.extract_strided_slice %7 {offsets = [0, 512], sizes = [16, 256], strides = [1, 1]} : vector<16x768xf32> to vector<16x256xf32>
    %c0_6 = arith.constant 0 : index
    %c0_7 = arith.constant 0 : index
    %10 = vector.load %arg4[%c0_6, %c0_7] : memref<512x512xf32, #tpu.memory_space<vmem>>, vector<512x512xf32>
    %cst_8 = arith.constant dense<0.000000e+00> : vector<16x512xf32>
    %11 = tpu.matmul %8, %10, %cst_8 {dimension_numbers = #tpu.dot_dimension_numbers<[1], [0], [0], [1], [0, 0, 1, 1], [], []>} : vector<16x512xf32>, vector<512x512xf32>, vector<16x512xf32> -> vector<16x512xf32>
    %c0_9 = arith.constant 0 : index
    %c0_10 = arith.constant 0 : index
    %12 = vector.load %arg5[%c0_9, %c0_10] : memref<1x512xf32, #tpu.memory_space<vmem>>, vector<1x512xf32>
    %13 = vector.broadcast %12 : vector<1x512xf32> to vector<16x512xf32>
    %14 = arith.addf %11, %13 : vector<16x512xf32>
    %cst_11 = arith.constant 0.000000e+00 : f32
    %15 = vector.broadcast %cst_11 : f32 to vector<16x512xf32>
    %16 = arith.maximumf %14, %15 : vector<16x512xf32>
    %c0_12 = arith.constant 0 : index
    %c0_13 = arith.constant 0 : index
    %17 = vector.load %arg6[%c0_12, %c0_13] : memref<512x38xf32, #tpu.memory_space<vmem>>, vector<512x38xf32>
    %cst_14 = arith.constant dense<0.000000e+00> : vector<16x38xf32>
    %18 = tpu.matmul %16, %17, %cst_14 {dimension_numbers = #tpu.dot_dimension_numbers<[1], [0], [0], [1], [0, 0, 1, 1], [], []>} : vector<16x512xf32>, vector<512x38xf32>, vector<16x38xf32> -> vector<16x38xf32>
    %c0_15 = arith.constant 0 : index
    %c0_16 = arith.constant 0 : index
    %19 = vector.load %arg7[%c0_15, %c0_16] : memref<1x38xf32, #tpu.memory_space<vmem>>, vector<1x38xf32>
    %20 = vector.broadcast %19 : vector<1x38xf32> to vector<16x38xf32>
    %21 = arith.addf %18, %20 : vector<16x38xf32>
    %cst_17 = arith.constant 1.000000e-01 : f32
    %22 = vector.broadcast %cst_17 : f32 to vector<16x38xf32>
    %23 = arith.mulf %22, %0 : vector<16x38xf32>
    %24 = arith.addf %21, %23 : vector<16x38xf32>
    %c0_18 = arith.constant 0 : index
    %c0_19 = arith.constant 0 : index
    %25 = vector.load %arg8[%c0_18, %c0_19] : memref<256x38xf32, #tpu.memory_space<vmem>>, vector<256x38xf32>
    %cst_20 = arith.constant dense<0.000000e+00> : vector<16x38xf32>
    %26 = tpu.matmul %9, %25, %cst_20 {dimension_numbers = #tpu.dot_dimension_numbers<[1], [0], [0], [1], [0, 0, 1, 1], [], []>} : vector<16x256xf32>, vector<256x38xf32>, vector<16x38xf32> -> vector<16x38xf32>
    %c0_21 = arith.constant 0 : index
    %c0_22 = arith.constant 0 : index
    %27 = vector.load %arg9[%c0_21, %c0_22] : memref<1x38xf32, #tpu.memory_space<vmem>>, vector<1x38xf32>
    %28 = vector.broadcast %27 : vector<1x38xf32> to vector<16x38xf32>
    %29 = arith.addf %26, %28 : vector<16x38xf32>
    %30 = arith.negf %29 : vector<16x38xf32>
    %31 = math.exp %30 : vector<16x38xf32>
    %cst_23 = arith.constant 1.000000e+00 : f32
    %32 = vector.broadcast %cst_23 : f32 to vector<16x38xf32>
    %33 = arith.addf %32, %31 : vector<16x38xf32>
    %34 = arith.divf %32, %33 : vector<16x38xf32>
    %cst_24 = arith.constant 1.000000e+00 : f32
    %35 = vector.broadcast %cst_24 : f32 to vector<16x38xf32>
    %36 = arith.subf %35, %34 : vector<16x38xf32>
    %37 = arith.mulf %36, %0 : vector<16x38xf32>
    %38 = arith.mulf %34, %24 : vector<16x38xf32>
    %39 = arith.addf %37, %38 : vector<16x38xf32>
    %c0_25 = arith.constant 0 : index
    %c0_26 = arith.constant 0 : index
    %40 = vector.load %arg10[%c0_25, %c0_26] : memref<16x38xf32, #tpu.memory_space<vmem>>, vector<16x38xf32>
    tpu.vector_store %arg10[%c0_25, %c0_26], %39 {strides = array<i32>} : memref<16x38xf32, #tpu.memory_space<vmem>>, vector<16x38xf32>,
    return
  }
  func.func @transform_0(%arg0: i32) -> (i32, i32) {
    %c0_i32 = arith.constant 0 : i32
    %c0_i32_0 = arith.constant 0 : i32
    return %arg0, %c0_i32 : i32, i32
  }
  func.func @transform_1(%arg0: i32) -> (i32, i32) {
    %c0_i32 = arith.constant 0 : i32
    %c0_i32_0 = arith.constant 0 : i32
    %c0_i32_1 = arith.constant 0 : i32
    return %c0_i32, %c0_i32_0 : i32, i32
  }
  func.func @transform_2(%arg0: i32) -> (i32, i32) {
    %c0_i32 = arith.constant 0 : i32
    %c0_i32_0 = arith.constant 0 : i32
    %c0_i32_1 = arith.constant 0 : i32
    return %c0_i32, %c0_i32_0 : i32, i32
  }
  func.func @transform_3(%arg0: i32) -> (i32, i32) {
    %c0_i32 = arith.constant 0 : i32
    %c0_i32_0 = arith.constant 0 : i32
    %c0_i32_1 = arith.constant 0 : i32
    return %c0_i32, %c0_i32_0 : i32, i32
  }
  func.func @transform_4(%arg0: i32) -> (i32, i32) {
    %c0_i32 = arith.constant 0 : i32
    %c0_i32_0 = arith.constant 0 : i32
    %c0_i32_1 = arith.constant 0 : i32
    return %c0_i32, %c0_i32_0 : i32, i32
  }
  func.func @transform_5(%arg0: i32) -> (i32, i32) {
    %c0_i32 = arith.constant 0 : i32
    %c0_i32_0 = arith.constant 0 : i32
    %c0_i32_1 = arith.constant 0 : i32
    return %c0_i32, %c0_i32_0 : i32, i32
  }
  func.func @transform_6(%arg0: i32) -> (i32, i32) {
    %c0_i32 = arith.constant 0 : i32
    %c0_i32_0 = arith.constant 0 : i32
    %c0_i32_1 = arith.constant 0 : i32
    return %c0_i32, %c0_i32_0 : i32, i32
  }
  func.func @transform_7(%arg0: i32) -> (i32, i32) {
    %c0_i32 = arith.constant 0 : i32
    %c0_i32_0 = arith.constant 0 : i32
    %c0_i32_1 = arith.constant 0 : i32
    return %c0_i32, %c0_i32_0 : i32, i32
  }
  func.func @transform_8(%arg0: i32) -> (i32, i32) {
    %c0_i32 = arith.constant 0 : i32
    %c0_i32_0 = arith.constant 0 : i32
    %c0_i32_1 = arith.constant 0 : i32
    return %c0_i32, %c0_i32_0 : i32, i32
  }
  func.func @transform_9(%arg0: i32) -> (i32, i32) {
    %c0_i32 = arith.constant 0 : i32
    %c0_i32_0 = arith.constant 0 : i32
    return %arg0, %c0_i32 : i32, i32
  }
}

</mosaic_0001>

<bundles_post_ra>
// kernel: tpu_custom_call.1
= control target key start
LH: loop header
LB: loop body
LE: loop exit
PB: predicated region body
PF: predicated region fallthrough
CT: control target
= control target key end

     0   :  { %14 = vsyncpa [#allocation3], 0  ;;  %s2516_s0 = inlined_call_operand.vmem [shape: f32[16,38], index: 0, kind: input, shape index: {}]   ;;  %s2517_s1 = inlined_call_operand.vmem [shape: f32[38,768], index: 1, kind: input, shape index: {}]   ;;  %s2518_s2 = inlined_call_operand.vmem [shape: f32[1,768], index: 2, kind: input, shape index: {}]   ;;  %s2519_s3 = inlined_call_operand.hbm [shape: f32[512,512], index: 3, kind: input, shape index: {}]   ;;  %s2520_s4 = inlined_call_operand.vmem [shape: f32[1,512], index: 4, kind: input, shape index: {}]   ;;  %s2521_s5 = inlined_call_operand.vmem [shape: f32[512,38], index: 5, kind: input, shape index: {}]   ;;  %s2522_s6 = inlined_call_operand.vmem [shape: f32[1,38], index: 6, kind: input, shape index: {}]   ;;  %s2523_s7 = inlined_call_operand.vmem [shape: f32[256,38], index: 7, kind: input, shape index: {}]   ;;  %s2524_s8 = inlined_call_operand.vmem [shape: f32[1,38], index: 8, kind: input, shape index: {}]   ;;  %s2525_s9 = inlined_call_operand.hbm [shape: f32[16,38], index: 9, kind: output, shape index: {}]  }
   0x1   :  { %15 = vsyncpa [#allocation4], 0  ;;  %s1940_s30 = smov [#allocation2]   ;;  %s1892_s13 = scalar_lea.hbm %s2519_s3, 32768 }
   0x2   :  { %s27_s10 = sshll.u32 %s1940_s30, 4  ;;  %p1893_p0 = scmp.ne.s32.totalorder %s2519_s3, %s1892_s13  ;;  %s28_s10 = int_to_ptr.vmem [resolvable:$true] %s27_s10 }
   0x3   :  { %p1896_p1 = scmp.lt.u32.totalorder %s1892_s13, %s2519_s3 }
   0x5   :  { %p1898_p2 = pnand %p1896_p1, %p1893_p0 }
   0x7   :  { %1901 = shalt.err (!%p1898_p2)
}
   0x8   :  { %s1902_s18 = scalar_lea.vmem %s28_s10, 32768  ;;  %p1907_p4 = scmp.lt.s32.totalorder %s28_s10, %s28_s10 }
   0x9   :  { %p1903_p3 = scmp.ne.s32.totalorder %s28_s10, %s1902_s18  ;;  %p1908_p5 = scmp.lt.s32.totalorder %s1902_s18, %s1902_s18 }
   0xb   :  { %p1909_p6 = por %p1908_p5, %p1907_p4 }
   0xd   :  { %p1910_p7 = pnand %p1909_p6, %p1903_p3 }
   0xf   :  { %1913 = shalt.err (!%p1910_p7)
}
  0x10   :  { %s1941_s19 = smov 512   ;;  %s1942_s20 = smov 32  }
  0x11   :  { %33 = dma.hbm_to_vmem [thread:$0]  %s2519_s3, 32768, %s28_s10, [#allocation3], %s1941_s19, %s1941_s19, %s1942_s20  }
  0x12   :  { %1936 = dma.done.wait [#allocation3], 32768  }
  0x13   :  { %1937 = vsyncadd [#allocation3], 4294934528  ;;  %v1943_v0 = vmov 0.0   ;;  %v50_v1 = vld [vmem:[%s2517_s1 + $0x8] sm:$0xff]  ;;  %v56_v2 = vld [vmem:[%s2517_s1 + $0x38] sm:$0xff]  ;;  %vm118_vm0 = vcmask 1045504  }
  0x14   :  { %201 = vmatprep.mubr.f32.mxu0 %v1943_v0  ;;  %v49_v3 = vld [vmem:[%s2517_s1] sm:$0xff]  ;;  %v1482_v4 = vpack.c.bf16 %v56_v2, %v50_v1  ;;  %v55_v5 = vld [vmem:[%s2517_s1 + $0x30] sm:$0xff]  ;;  %v62_v6 = vld [vmem:[%s2517_s1 + $0x68] sm:$0xff]  ;;  %vm111_vm1 = vcmask 310272   ;;  %s1944_s10 = smov [#allocation5]  }
  0x15   :  { %v68_v7 = vld [vmem:[%s2517_s1 + $0x98] sm:$0xff]  ;;  %v1484_v8 = vpack.c.bf16 %v55_v5, %v49_v3  ;;  %v61_v10 = vld [vmem:[%s2517_s1 + $0x60] sm:$0xff]  ;;  %v67_v11 = vld [vmem:[%s2517_s1 + $0x90] sm:$0xff]  ;;  %s1340_s11 = sshll.u32 %s1944_s10, 4  ;;  %s1341_s11 = int_to_ptr.vmem [resolvable:$true] %s1340_s11 }
  0x16   :  { %v1486_v9 = vpack.c.bf16 %v68_v7, %v62_v6  ;;  %1483 = vmatprep.subr.bf16.mxu0 %v1482_v4  ;;  %v1488_v12 = vpack.c.bf16 %v67_v11, %v61_v10  ;;  %v74_v13 = vld [vmem:[%s2517_s1 + $0xc8] sm:$0x3f]  ;;  %v52_v14 = vld [vmem:[%s2517_s1 + $0x18] sm:$0xff]  ;;  %v51_v16 = vld [vmem:[%s2517_s1 + $0x10] sm:$0xff]  ;;  %p1919_p9 = scmp.lt.s32.totalorder %s1341_s11, %s1341_s11 }
  0x17   :  { %1485 = vmatpush1.bf16.msra.mxu0 %v1484_v8  ;;  %v58_v15 = vld [vmem:[%s2517_s1 + $0x48] sm:$0xff]  ;;  %v57_v17 = vld [vmem:[%s2517_s1 + $0x40] sm:$0xff]  ;;  %v64_v18 = vld [vmem:[%s2517_s1 + $0x78] sm:$0xff] }
  0x18   :  { %1487 = vmatprep.subr.bf16.mxu0 %v1486_v9  ;;  %v70_v19 = vld [vmem:[%s2517_s1 + $0xa8] sm:$0xff]  ;;  %v73_v20 = vld [vmem:[%s2517_s1 + $0xc0] sm:$0x3f]  ;;  %v1490_v21 = vpack.c.bf16 %v58_v15, %v52_v14  ;;  %v1492_v23 = vpack.c.bf16 %v57_v17, %v51_v16  ;;  %v63_v26 = vld [vmem:[%s2517_s1 + $0x70] sm:$0xff] }
  0x19   :  { %v2062_v22 = vld [vmem:[%s2516_s0] sm:$0xff]  ;;  %v381_v24 = vld [vmem:[#allocation2 + $0x8] sm:$0xff]  ;;  %v1494_v25 = vpack.c.bf16 %v70_v19, %v64_v18  ;;  %v76_v39 = vld [vmem:[%s2517_s1 + $0xd8] sm:$0x3f] }
  0x1a   :  { %v69_v27 = vld [vmem:[%s2517_s1 + $0xa0] sm:$0xff]  ;;  %v385_v28 = vld [vmem:[#allocation2 + $0x28] sm:$0xff]  ;;  %v60_v42 = vld [vmem:[%s2517_s1 + $0x58] sm:$0xff] }
  0x1b   :  { %1489 = vmatpush1.bf16.msra.mxu0 %v1488_v12  ;;  %v1506_v29 = vpack.c.bf16 %v385_v28, %v381_v24  ;;  %v380_v30 = vld [vmem:[#allocation2] sm:$0xff]  ;;  %v389_v33 = vld [vmem:[#allocation2 + $0x48] sm:$0xff]  ;;  %v1496_v36 = vpack.c.bf16 %v69_v27, %v63_v26  ;;  %v59_v47 = vld [vmem:[%s2517_s1 + $0x50] sm:$0xff] }
  0x1c   :  { %1352 = vmatprep.subr.msk.mxu0 %vm118_vm0, %v74_v13  ;;  %v384_v31 = vld [vmem:[#allocation2 + $0x20] sm:$0xff]  ;;  %v393_v34 = vld [vmem:[#allocation2 + $0x68] sm:$0xff]  ;;  %v72_v50 = vld [vmem:[%s2517_s1 + $0xb8] sm:$0xff] }
  0x1d   :  { %v1508_v32 = vpack.c.bf16 %v384_v31, %v380_v30  ;;  %v2077_v35 = vld [vmem:[%s2516_s0 + $0x8] sm:$0xff]  ;;  %v1510_v37 = vpack.c.bf16 %v393_v34, %v389_v33  ;;  %v388_v38 = vld [vmem:[#allocation2 + $0x40] sm:$0xff]  ;;  %1507 = vmatprep.subr.bf16.mxu1 %v1506_v29  ;;  %v75_v53 = vld [vmem:[%s2517_s1 + $0xd0] sm:$0x3f] }
  0x1e   :  { %v54_v40 = vld [vmem:[%s2517_s1 + $0x28] sm:$0xff]  ;;  %v392_v41 = vld [vmem:[#allocation2 + $0x60] sm:$0xff]  ;;  %v71_v60 = vld [vmem:[%s2517_s1 + $0xb0] sm:$0xff] }
  0x1f   :  { %1353 = vmatpush1.msk.msra.mxu0 %vm118_vm0, %v73_v20  ;;  %1509 = vmatpush1.bf16.msra.mxu1 %v1508_v32  ;;  %v1512_v43 = vpack.c.bf16 %v392_v41, %v388_v38  ;;  %v397_v44 = vld [vmem:[#allocation2 + $0x88] sm:$0xff]  ;;  %v53_v46 = vld [vmem:[%s2517_s1 + $0x20] sm:$0xff]  ;;  %v1498_v54 = vpack.c.bf16 %v60_v42, %v54_v40  ;;  %v383_v6 = vld [vmem:[#allocation2 + $0x18] sm:$0xff] }
  0x20   :  { %1354 = vmatmul.mubr.msk.f32.vlgmr.msra.gmra.mrb[0].mxu0 %vm111_vm1, %v2062_v22  ;;  %1491 = vmatprep.subr.bf16.mxu0 %v1490_v21  ;;  %v401_v45 = vld [vmem:[#allocation2 + $0xa8] sm:$0xff]  ;;  %v396_v51 = vld [vmem:[#allocation2 + $0x80] sm:$0xff]  ;;  %v1500_v57 = vpack.c.bf16 %v59_v47, %v53_v46  ;;  %v387_v8 = vld [vmem:[#allocation2 + $0x38] sm:$0xff] }
  0x21   :  { %1493 = vmatpush1.bf16.msra.mxu0 %v1492_v23  ;;  %207 = vmatprep.mubr.f32.mxu0 %v1943_v0  ;;  %v66_v48 = vld [vmem:[%s2517_s1 + $0x88] sm:$0xff]  ;;  %v1514_v49 = vpack.c.bf16 %v401_v45, %v397_v44  ;;  %v400_v52 = vld [vmem:[#allocation2 + $0xa0] sm:$0xff]  ;;  %v382_v9 = vld [vmem:[#allocation2 + $0x10] sm:$0xff]  ;;  %v1634_v19 = vpack.c.bf16 %v387_v8, %v383_v6 }
  0x22   :  { %1495 = vmatprep.subr.bf16.mxu0 %v1494_v25  ;;  %1511 = vmatprep.subr.bf16.mxu1 %v1510_v37  ;;  %v405_v55 = vld [vmem:[#allocation2 + $0xc8] sm:$0xff]  ;;  %v1502_v58 = vpack.c.bf16 %v72_v50, %v66_v48  ;;  %v65_v59 = vld [vmem:[%s2517_s1 + $0x80] sm:$0xff]  ;;  %v1516_v61 = vpack.c.bf16 %v400_v52, %v396_v51  ;;  %v386_v10 = vld [vmem:[#allocation2 + $0x30] sm:$0xff] }
  0x23   :  { %v409_v56 = vld [vmem:[#allocation2 + $0xe8] sm:$0xff]  ;;  %1513 = vmatpush1.bf16.msra.mxu1 %v1512_v43  ;;  %v404_v63 = vld [vmem:[#allocation2 + $0xc0] sm:$0xff]  ;;  %v1504_v4 = vpack.c.bf16 %v71_v60, %v65_v59  ;;  %v391_v12 = vld [vmem:[#allocation2 + $0x58] sm:$0xff]  ;;  %v1636_v20 = vpack.c.bf16 %v386_v10, %v382_v9 }
  0x24   :  { %1355 = vmatmul.mubr.msk.f32.gmra.mrb[2].mxu0 %vm111_vm1, %v2077_v35  ;;  %1515 = vmatprep.subr.bf16.mxu1 %v1514_v49  ;;  %v1518_v62 = vpack.c.bf16 %v409_v56, %v405_v55  ;;  %v408_v1 = vld [vmem:[#allocation2 + $0xe0] sm:$0xff]  ;;  %v413_v2 = vld [vmem:[#allocation2 + $0x108] sm:$0xff]  ;;  %v395_v15 = vld [vmem:[#allocation2 + $0x78] sm:$0xff] }
  0x25   :  { %1497 = vmatpush1.bf16.msra.mxu0 %v1496_v36  ;;  %278 = vmatprep.mubr.f32.mxu0 %v1943_v0  ;;  %v417_v3 = vld [vmem:[#allocation2 + $0x128] sm:$0xff]  ;;  %v1520_v7 = vpack.c.bf16 %v408_v1, %v404_v63  ;;  %v412_v13 = vld [vmem:[#allocation2 + $0x100] sm:$0xff]  ;;  %v390_v21 = vld [vmem:[#allocation2 + $0x50] sm:$0xff]  ;;  %v1638_v25 = vpack.c.bf16 %v395_v15, %v391_v12 }
  0x26   :  { %1356 = vmatprep.subr.msk.mxu0 %vm118_vm0, %v76_v39  ;;  %v78_v5 = vld [vmem:[%s2517_s1 + $0xe8] sm:$0x3f]  ;;  %v1522_v11 = vpack.c.bf16 %v417_v3, %v413_v2  ;;  %v416_v14 = vld [vmem:[#allocation2 + $0x120] sm:$0xff]  ;;  %v394_v23 = vld [vmem:[#allocation2 + $0x70] sm:$0xff] }
  0x27   :  { %1517 = vmatpush1.bf16.msra.mxu1 %v1516_v61  ;;  %v421_v16 = vld [vmem:[#allocation2 + $0x148] sm:$0xff]  ;;  %v77_v18 = vld [vmem:[%s2517_s1 + $0xe0] sm:$0x3f]  ;;  %v1524_v24 = vpack.c.bf16 %v416_v14, %v412_v13  ;;  %v399_v26 = vld [vmem:[#allocation2 + $0x98] sm:$0xff]  ;;  %v1640_v33 = vpack.c.bf16 %v394_v23, %v390_v21 }
  0x28   :  { %1519 = vmatprep.subr.bf16.mxu1 %v1518_v62  ;;  %v425_v17 = vld [vmem:[#allocation2 + $0x168] sm:$0xff]  ;;  %v420_v28 = vld [vmem:[#allocation2 + $0x140] sm:$0xff]  ;;  %v403_v30 = vld [vmem:[#allocation2 + $0xb8] sm:$0xff] }
  0x29   :  { %1357 = vmatpush1.msk.msra.mxu0 %vm118_vm0, %v75_v53  ;;  %v1526_v27 = vpack.c.bf16 %v425_v17, %v421_v16  ;;  %v424_v29 = vld [vmem:[#allocation2 + $0x160] sm:$0xff]  ;;  %v429_v31 = vld [vmem:[#allocation2 + $0x188] sm:$0xff]  ;;  %v398_v34 = vld [vmem:[#allocation2 + $0x90] sm:$0xff]  ;;  %v1642_v38 = vpack.c.bf16 %v403_v30, %v399_v26 }
  0x2a   :  { %1358 = vmatmul.mubr.msk.f32.vlgmr.msra.gmra.mrb[4].mxu0 %vm111_vm1, %v2062_v22  ;;  %1499 = vmatprep.subr.bf16.mxu0 %v1498_v54  ;;  %v433_v32 = vld [vmem:[#allocation2 + $0x1a8] sm:$0xff]  ;;  %v402_v36 = vld [vmem:[#allocation2 + $0xb0] sm:$0xff]  ;;  %v1528_v37 = vpack.c.bf16 %v424_v29, %v420_v28  ;;  %v407_v39 = vld [vmem:[#allocation2 + $0xd8] sm:$0xff] }
  0x2b   :  { %284 = vmatprep.mubr.f32.mxu0 %v1943_v0  ;;  %1501 = vmatpush1.bf16.msra.mxu0 %v1500_v57  ;;  %v1530_v40 = vpack.c.bf16 %v433_v32, %v429_v31  ;;  %v428_v41 = vld [vmem:[#allocation2 + $0x180] sm:$0xff]  ;;  %v411_v43 = vld [vmem:[#allocation2 + $0xf8] sm:$0xff]  ;;  %v437_v44 = vld [vmem:[#allocation2 + $0x1c8] sm:$0xff] }
  0x2c   :  { %1503 = vmatprep.subr.bf16.mxu0 %v1502_v58  ;;  %1521 = vmatpush1.bf16.msra.mxu1 %v1520_v7  ;;  %v432_v42 = vld [vmem:[#allocation2 + $0x1a0] sm:$0xff]  ;;  %v441_v45 = vld [vmem:[#allocation2 + $0x1e8] sm:$0xff]  ;;  %v406_v46 = vld [vmem:[#allocation2 + $0xd0] sm:$0xff]  ;;  %v1646_v49 = vpack.c.bf16 %v411_v43, %v407_v39 }
  0x2d   :  { %1523 = vmatprep.subr.bf16.mxu1 %v1522_v11  ;;  %v410_v47 = vld [vmem:[#allocation2 + $0xf0] sm:$0xff]  ;;  %v1532_v48 = vpack.c.bf16 %v432_v42, %v428_v41  ;;  %v415_v50 = vld [vmem:[#allocation2 + $0x118] sm:$0xff]  ;;  %v1534_v51 = vpack.c.bf16 %v441_v45, %v437_v44  ;;  %v436_v52 = vld [vmem:[#allocation2 + $0x1c0] sm:$0xff] }
  0x2e   :  { %1359 = vmatmul.mubr.msk.f32.gmra.mrb[6].mxu0 %vm111_vm1, %v2077_v35  ;;  %v440_v53 = vld [vmem:[#allocation2 + $0x1e0] sm:$0xff]  ;;  %v419_v54 = vld [vmem:[#allocation2 + $0x138] sm:$0xff]  ;;  %v445_v55 = vld [vmem:[#allocation2 + $0x208] sm:$0xff] }
  0x2f   :  { %1505 = vmatpush1.bf16.msra.mxu0 %v1504_v4  ;;  %355 = vmatprep.mubr.f32.mxu0 %v1943_v0  ;;  %v449_v56 = vld [vmem:[#allocation2 + $0x228] sm:$0xff]  ;;  %v414_v57 = vld [vmem:[#allocation2 + $0x110] sm:$0xff]  ;;  %v1536_v58 = vpack.c.bf16 %v440_v53, %v436_v52  ;;  %v1650_v59 = vpack.c.bf16 %v419_v54, %v415_v50  ;;  %v423_v60 = vld [vmem:[#allocation2 + $0x158] sm:$0xff] }
  0x30   :  { %1360 = vmatprep.subr.msk.mxu0 %vm118_vm0, %v78_v5  ;;  %1525 = vmatpush1.bf16.msra.mxu1 %v1524_v24  ;;  %v1538_v61 = vpack.c.bf16 %v449_v56, %v445_v55  ;;  %v444_v62 = vld [vmem:[#allocation2 + $0x200] sm:$0xff]  ;;  %v427_v1 = vld [vmem:[#allocation2 + $0x178] sm:$0xff]  ;;  %v453_v2 = vld [vmem:[#allocation2 + $0x248] sm:$0xff] }
  0x31   :  { %1527 = vmatprep.subr.bf16.mxu1 %v1526_v27  ;;  %v448_v63 = vld [vmem:[#allocation2 + $0x220] sm:$0xff]  ;;  %v457_v3 = vld [vmem:[#allocation2 + $0x268] sm:$0xff]  ;;  %v422_v5 = vld [vmem:[#allocation2 + $0x150] sm:$0xff]  ;;  %v1654_v8 = vpack.c.bf16 %v427_v1, %v423_v60 }
  0x32   :  { %v426_v6 = vld [vmem:[#allocation2 + $0x170] sm:$0xff]  ;;  %v1540_v7 = vpack.c.bf16 %v448_v63, %v444_v62  ;;  %v431_v9 = vld [vmem:[#allocation2 + $0x198] sm:$0xff]  ;;  %v1542_v10 = vpack.c.bf16 %v457_v3, %v453_v2  ;;  %v452_v11 = vld [vmem:[#allocation2 + $0x240] sm:$0xff] }
  0x33   :  { %1361 = vmatpush1.msk.msra.mxu0 %vm118_vm0, %v77_v18  ;;  %v456_v12 = vld [vmem:[#allocation2 + $0x260] sm:$0xff]  ;;  %v435_v13 = vld [vmem:[#allocation2 + $0x1b8] sm:$0xff]  ;;  %v461_v14 = vld [vmem:[#allocation2 + $0x288] sm:$0xff]  ;;  %v1656_v16 = vpack.c.bf16 %v426_v6, %v422_v5 }
  0x34   :  { %1635 = vmatprep.subr.bf16.mxu0 %v1634_v19  ;;  %1362 = vmatmul.mubr.msk.f32.vlgmr.msra.gmra.mrb[8].mxu0 %vm111_vm1, %v2062_v22  ;;  %v1644_v22 = vpack.c.bf16 %v402_v36, %v398_v34  ;;  %v465_v15 = vld [vmem:[#allocation2 + $0x2a8] sm:$0xff]  ;;  %v430_v17 = vld [vmem:[#allocation2 + $0x190] sm:$0xff]  ;;  %v1544_v19 = vpack.c.bf16 %v456_v12, %v452_v11  ;;  %v439_v21 = vld [vmem:[#allocation2 + $0x1d8] sm:$0xff] }
  0x35   :  { %1637 = vmatpush1.bf16.msra.mxu0 %v1636_v20  ;;  %361 = vmatprep.mubr.f32.mxu0 %v1943_v0  ;;  %v1648_v0 = vpack.c.bf16 %v410_v47, %v406_v46  ;;  %v434_v18 = vld [vmem:[#allocation2 + $0x1b0] sm:$0xff]  ;;  %v1658_v20 = vpack.c.bf16 %v435_v13, %v431_v9  ;;  %v1546_v23 = vpack.c.bf16 %v465_v15, %v461_v14  ;;  %v460_v24 = vld [vmem:[#allocation2 + $0x280] sm:$0xff]  ;;  %v443_v26 = vld [vmem:[#allocation2 + $0x1f8] sm:$0xff] }
  0x36   :  { %1639 = vmatprep.subr.bf16.mxu0 %v1638_v25  ;;  %1529 = vmatpush1.bf16.msra.mxu1 %v1528_v37  ;;  %v464_v25 = vld [vmem:[#allocation2 + $0x2a0] sm:$0xff]  ;;  %v469_v27 = vld [vmem:[#allocation2 + $0x2c8] sm:$0xff]  ;;  %v1660_v29 = vpack.c.bf16 %v434_v18, %v430_v17  ;;  %v438_v30 = vld [vmem:[#allocation2 + $0x1d0] sm:$0xff] }
  0x37   :  { %1531 = vmatprep.subr.bf16.mxu1 %v1530_v40  ;;  %v473_v28 = vld [vmem:[#allocation2 + $0x2e8] sm:$0xff]  ;;  %v442_v31 = vld [vmem:[#allocation2 + $0x1f0] sm:$0xff]  ;;  %v1548_v32 = vpack.c.bf16 %v464_v25, %v460_v24  ;;  %v447_v34 = vld [vmem:[#allocation2 + $0x218] sm:$0xff] }
  0x38   :  { %1363 = vmatmul.mubr.msk.f32.gmra.mrb[10].mxu0 %vm111_vm1, %v2077_v35  ;;  %v418_v35 = vld [vmem:[#allocation2 + $0x130] sm:$0xff]  ;;  %v1550_v36 = vpack.c.bf16 %v473_v28, %v469_v27  ;;  %v468_v37 = vld [vmem:[#allocation2 + $0x2c0] sm:$0xff]  ;;  %v451_v39 = vld [vmem:[#allocation2 + $0x238] sm:$0xff]  ;;  %v1664_v42 = vpack.c.bf16 %v442_v31, %v438_v30 }
  0x39   :  { %1641 = vmatpush1.bf16.msra.mxu0 %v1640_v33  ;;  %v1652_v4 = vpack.c.bf16 %v418_v35, %v414_v57  ;;  %v1662_v33 = vpack.c.bf16 %v443_v26, %v439_v21  ;;  %v477_v40 = vld [vmem:[#allocation2 + $0x308] sm:$0xff]  ;;  %v446_v43 = vld [vmem:[#allocation2 + $0x210] sm:$0xff]  ;;  %v455_v46 = vld [vmem:[#allocation2 + $0x258] sm:$0xff] }
  0x3a   :  { %1643 = vmatprep.subr.bf16.mxu0 %v1642_v38  ;;  %1533 = vmatpush1.bf16.msra.mxu1 %v1532_v48  ;;  %v472_v38 = vld [vmem:[#allocation2 + $0x2e0] sm:$0xff]  ;;  %v481_v41 = vld [vmem:[#allocation2 + $0x328] sm:$0xff]  ;;  %v450_v44 = vld [vmem:[#allocation2 + $0x230] sm:$0xff] }
  0x3b   :  { %1535 = vmatprep.subr.bf16.mxu1 %v1534_v51  ;;  %v1552_v45 = vpack.c.bf16 %v472_v38, %v468_v37  ;;  %v1554_v47 = vpack.c.bf16 %v481_v41, %v477_v40  ;;  %v476_v48 = vld [vmem:[#allocation2 + $0x300] sm:$0xff]  ;;  %v459_v50 = vld [vmem:[#allocation2 + $0x278] sm:$0xff]  ;;  %v485_v51 = vld [vmem:[#allocation2 + $0x348] sm:$0xff]  ;;  %v1668_v53 = vpack.c.bf16 %v450_v44, %v446_v43 }
  0x3c   :  { %v489_v52 = vld [vmem:[#allocation2 + $0x368] sm:$0xff]  ;;  %v454_v54 = vld [vmem:[#allocation2 + $0x250] sm:$0xff]  ;;  %v463_v57 = vld [vmem:[#allocation2 + $0x298] sm:$0xff] }
  0x3d   :  { %1645 = vmatpush1.bf16.msra.mxu0 %v1644_v22  ;;  %v1666_v22 = vpack.c.bf16 %v451_v39, %v447_v34  ;;  %v458_v55 = vld [vmem:[#allocation2 + $0x270] sm:$0xff]  ;;  %v1558_v35 = vpack.c.bf16 %v489_v52, %v485_v51  ;;  %v467_v60 = vld [vmem:[#allocation2 + $0x2b8] sm:$0xff]  ;;  %v497_v62 = vld [vmem:[#allocation2 + $0x3a8] sm:$0xff] }
  0x3e   :  { %1647 = vmatprep.subr.bf16.mxu0 %v1646_v49  ;;  %1537 = vmatpush1.bf16.msra.mxu1 %v1536_v58  ;;  %v480_v49 = vld [vmem:[#allocation2 + $0x320] sm:$0xff]  ;;  %v1672_v63 = vpack.c.bf16 %v458_v55, %v454_v54  ;;  %v462_v1 = vld [vmem:[#allocation2 + $0x290] sm:$0xff]  ;;  %v1674_v3 = vpack.c.bf16 %v467_v60, %v463_v57  ;;  %v475_v9 = vld [vmem:[#allocation2 + $0x2f8] sm:$0xff] }
  0x3f   :  { %1539 = vmatprep.subr.bf16.mxu1 %v1538_v61  ;;  %v1556_v56 = vpack.c.bf16 %v480_v49, %v476_v48  ;;  %v484_v58 = vld [vmem:[#allocation2 + $0x340] sm:$0xff]  ;;  %v493_v61 = vld [vmem:[#allocation2 + $0x388] sm:$0xff]  ;;  %v470_v13 = vld [vmem:[#allocation2 + $0x2d0] sm:$0xff] }
  0x40   :  { %v1562_v5 = vpack.c.bf16 %v497_v62, %v493_v61  ;;  %v492_v6 = vld [vmem:[#allocation2 + $0x380] sm:$0xff]  ;;  %v474_v14 = vld [vmem:[#allocation2 + $0x2f0] sm:$0xff]  ;;  %v479_v15 = vld [vmem:[#allocation2 + $0x318] sm:$0xff] }
  0x41   :  { %1649 = vmatpush1.bf16.msra.mxu0 %v1648_v0  ;;  %v1670_v0 = vpack.c.bf16 %v459_v50, %v455_v46  ;;  %v1680_v17 = vpack.c.bf16 %v474_v14, %v470_v13  ;;  %v487_v21 = vld [vmem:[#allocation2 + $0x358] sm:$0xff]  ;;  %v486_v26 = vld [vmem:[#allocation2 + $0x350] sm:$0xff]  ;;  %v505_v37 = vld [vmem:[#allocation2 + $0x3e8] sm:$0xff] }
  0x42   :  { %1651 = vmatprep.subr.bf16.mxu0 %v1650_v59  ;;  %1541 = vmatpush1.bf16.msra.mxu1 %v1540_v7  ;;  %v488_v59 = vld [vmem:[#allocation2 + $0x360] sm:$0xff]  ;;  %v490_v27 = vld [vmem:[#allocation2 + $0x370] sm:$0xff]  ;;  %v495_v28 = vld [vmem:[#allocation2 + $0x398] sm:$0xff] }
  0x43   :  { %1543 = vmatprep.subr.bf16.mxu1 %v1542_v10  ;;  %v1560_v2 = vpack.c.bf16 %v488_v59, %v484_v58  ;;  %v496_v7 = vld [vmem:[#allocation2 + $0x3a0] sm:$0xff]  ;;  %v1688_v30 = vpack.c.bf16 %v490_v27, %v486_v26  ;;  %v503_v38 = vld [vmem:[#allocation2 + $0x3d8] sm:$0xff]  ;;  %v513_v48 = vld [vmem:[#allocation2 + $0x428] sm:$0xff] }
  0x44   :  { %v1564_v11 = vpack.c.bf16 %v496_v7, %v492_v6  ;;  %v507_v40 = vld [vmem:[#allocation2 + $0x3f8] sm:$0xff]  ;;  %v500_v41 = vld [vmem:[#allocation2 + $0x3c0] sm:$0xff] }
  0x45   :  { %1653 = vmatpush1.bf16.msra.mxu0 %v1652_v4  ;;  %v466_v4 = vld [vmem:[#allocation2 + $0x2b0] sm:$0xff]  ;;  %v1694_v43 = vpack.c.bf16 %v507_v40, %v503_v38  ;;  %v511_v49 = vld [vmem:[#allocation2 + $0x418] sm:$0xff]  ;;  %v508_v59 = vld [vmem:[#allocation2 + $0x400] sm:$0xff] }
  0x46   :  { %1655 = vmatprep.subr.bf16.mxu0 %v1654_v8  ;;  %1545 = vmatpush1.bf16.msra.mxu1 %v1544_v19  ;;  %v471_v8 = vld [vmem:[#allocation2 + $0x2d8] sm:$0xff]  ;;  %v1676_v10 = vpack.c.bf16 %v466_v4, %v462_v1  ;;  %v478_v19 = vld [vmem:[#allocation2 + $0x310] sm:$0xff]  ;;  %v512_v60 = vld [vmem:[#allocation2 + $0x420] sm:$0xff] }
  0x47   :  { %1547 = vmatprep.subr.bf16.mxu1 %v1546_v23  ;;  %v1678_v12 = vpack.c.bf16 %v475_v9, %v471_v8  ;;  %v491_v23 = vld [vmem:[#allocation2 + $0x378] sm:$0xff]  ;;  %v514_v1 = vld [vmem:[#allocation2 + $0x430] sm:$0xff]  ;;  %v521_v4 = vld [vmem:[#allocation2 + $0x468] sm:$0xff]  ;;  %v1572_v8 = vpack.c.bf16 %v512_v60, %v508_v59 }
  0x48   :  { %v1686_v25 = vpack.c.bf16 %v491_v23, %v487_v21  ;;  %v515_v51 = vld [vmem:[#allocation2 + $0x438] sm:$0xff]  ;;  %v529_v23 = vld [vmem:[#allocation2 + $0x4a8] sm:$0xff]  ;;  %v530_v38 = vld [vmem:[#allocation2 + $0x4b0] sm:$0xff] }
  0x49   :  { %1657 = vmatpush1.bf16.msra.mxu0 %v1656_v16  ;;  %v483_v16 = vld [vmem:[#allocation2 + $0x338] sm:$0xff]  ;;  %v1698_v52 = vpack.c.bf16 %v515_v51, %v511_v49  ;;  %v537_v40 = vld [vmem:[#allocation2 + $0x4e8] sm:$0xff]  ;;  %v534_v51 = vld [vmem:[#allocation2 + $0x4d0] sm:$0xff] }
  0x4a   :  { %1659 = vmatprep.subr.bf16.mxu0 %v1658_v20  ;;  %1549 = vmatpush1.bf16.msra.mxu1 %v1548_v32  ;;  %v1682_v18 = vpack.c.bf16 %v483_v16, %v479_v15  ;;  %v482_v20 = vld [vmem:[#allocation2 + $0x330] sm:$0xff]  ;;  %v523_v6 = vld [vmem:[#allocation2 + $0x478] sm:$0xff] }
  0x4b   :  { %1551 = vmatprep.subr.bf16.mxu1 %v1550_v36  ;;  %v1684_v24 = vpack.c.bf16 %v482_v20, %v478_v19  ;;  %v494_v32 = vld [vmem:[#allocation2 + $0x390] sm:$0xff]  ;;  %v501_v36 = vld [vmem:[#allocation2 + $0x3c8] sm:$0xff] }
  0x4c   :  { %v1566_v39 = vpack.c.bf16 %v505_v37, %v501_v36  ;;  %v525_v19 = vld [vmem:[#allocation2 + $0x488] sm:$0xff]  ;;  %v526_v37 = vld [vmem:[#allocation2 + $0x490] sm:$0xff] }
  0x4d   :  { %1661 = vmatpush1.bf16.msra.mxu0 %v1660_v29  ;;  %v499_v29 = vld [vmem:[#allocation2 + $0x3b8] sm:$0xff] }
  0x4e   :  { %1663 = vmatprep.subr.bf16.mxu0 %v1662_v33  ;;  %1553 = vmatpush1.bf16.msra.mxu1 %v1552_v45  ;;  %v1690_v31 = vpack.c.bf16 %v499_v29, %v495_v28  ;;  %v498_v33 = vld [vmem:[#allocation2 + $0x3b0] sm:$0xff] }
  0x4f   :  { %1555 = vmatprep.subr.bf16.mxu1 %v1554_v47  ;;  %v1692_v34 = vpack.c.bf16 %v498_v33, %v494_v32  ;;  %v502_v45 = vld [vmem:[#allocation2 + $0x3d0] sm:$0xff]  ;;  %v509_v47 = vld [vmem:[#allocation2 + $0x408] sm:$0xff] }
  0x50   :  { %v1570_v50 = vpack.c.bf16 %v513_v48, %v509_v47  ;;  %v536_v47 = vld [vmem:[#allocation2 + $0x4e0] sm:$0xff] }
  0x51   :  { %1665 = vmatpush1.bf16.msra.mxu0 %v1664_v42  ;;  %v504_v42 = vld [vmem:[#allocation2 + $0x3e0] sm:$0xff] }
  0x52   :  { %1667 = vmatprep.subr.bf16.mxu0 %v1666_v22  ;;  %1557 = vmatpush1.bf16.msra.mxu1 %v1556_v56  ;;  %v1568_v44 = vpack.c.bf16 %v504_v42, %v500_v41  ;;  %v506_v22 = vld [vmem:[#allocation2 + $0x3f0] sm:$0xff]  ;;  %v2139_v56 = vld [vmem:[%s2518_s2] sm:$0x3f]  ;;  %v535_v41 = vld [vmem:[#allocation2 + $0x4d8] sm:$0xff] }
  0x53   :  { %1559 = vmatprep.subr.bf16.mxu1 %v1558_v35  ;;  %v1696_v46 = vpack.c.bf16 %v506_v22, %v502_v45  ;;  %v539_v42 = vld [vmem:[#allocation2 + $0x4f8] sm:$0xff]  ;;  %v1708_v22 = vpack.c.bf16 %v530_v38, %v526_v37  ;;  %v562_v37 = vld [vmem:[#allocation2 + $0x5b0] sm:$0xff]  ;;  %v565_v38 = vld [vmem:[#allocation2 + $0x5c8] sm:$0xff] }
  0x55   :  { %1669 = vmatpush1.bf16.msra.mxu0 %v1668_v53  ;;  %v81_v53 = vlaneseq }
  0x56   :  { %1671 = vmatprep.subr.bf16.mxu0 %v1670_v0  ;;  %1561 = vmatpush1.bf16.msra.mxu1 %v1560_v2  ;;  %v517_v2 = vld [vmem:[#allocation2 + $0x448] sm:$0xff] }
  0x57   :  { %1563 = vmatprep.subr.bf16.mxu1 %v1562_v5  ;;  %v2133_v54 = vshrl.u32 %v81_v53, 7  ;;  %v519_v5 = vld [vmem:[#allocation2 + $0x458] sm:$0xff]  ;;  %v1574_v15 = vpack.c.bf16 %v521_v4, %v517_v2  ;;  %v541_v53 = vld [vmem:[#allocation2 + $0x508] sm:$0xff]  ;;  %v544_v2 = vld [vmem:[#allocation2 + $0x520] sm:$0xff] }
  0x58   :  { %v1702_v16 = vpack.c.bf16 %v523_v6, %v519_v5  ;;  %v542_v5 = vld [vmem:[#allocation2 + $0x510] sm:$0xff] }
  0x59   :  { %1673 = vmatpush1.bf16.msra.mxu0 %v1672_v63  ;;  %v83_v55 = vsub.s32 0, %v2133_v54  ;;  %v87_v0 = vsub.s32 1, %v2133_v54  ;;  %v510_v63 = vld [vmem:[#allocation2 + $0x410] sm:$0xff]  ;;  %v95_v13 = vsub.s32 3, %v2133_v54 }
  0x5a   :  { %1675 = vmatprep.subr.bf16.mxu0 %v1674_v3  ;;  %1565 = vmatpush1.bf16.msra.mxu1 %v1564_v11  ;;  %v1700_v9 = vpack.c.bf16 %v514_v1, %v510_v63  ;;  %v520_v11 = vld [vmem:[#allocation2 + $0x460] sm:$0xff]  ;;  %v546_v6 = vld [vmem:[#allocation2 + $0x530] sm:$0xff] }
  0x5b   :  { %1567 = vmatprep.subr.bf16.mxu1 %v1566_v39  ;;  %v84_v57 = vrot.slane %v2139_v56, %v83_v55  ;;  %v88_v35 = vrot.slane %v2139_v56, %v87_v0  ;;  %v2152_v33 = vrot.slane %v2139_v56, %v95_v13  ;;  %v533_v39 = vld [vmem:[#allocation2 + $0x4c8] sm:$0xff]  ;;  %v540_v1 = vld [vmem:[#allocation2 + $0x500] sm:$0xff] }
  0x5c   :  { %v1582_v49 = vpack.c.bf16 %v537_v40, %v533_v39  ;;  %v569_v40 = vld [vmem:[#allocation2 + $0x5e8] sm:$0xff] }
  0x5d   :  { %1677 = vmatpush1.bf16.msra.mxu0 %v1676_v10  ;;  %v516_v10 = vld [vmem:[#allocation2 + $0x440] sm:$0xff] }
  0x5e   :  { %1679 = vmatprep.subr.bf16.mxu0 %v1678_v12  ;;  %1569 = vmatpush1.bf16.msra.mxu1 %v1568_v44  ;;  %v1576_v28 = vpack.c.bf16 %v520_v11, %v516_v10  ;;  %v555_v10 = vld [vmem:[#allocation2 + $0x578] sm:$0xff]  ;;  %v1588_v11 = vpack.c.bf16 %v544_v2, %v540_v1  ;;  %v574_v2 = vld [vmem:[#allocation2 + $0x610] sm:$0xff] }
  0x5f   :  { %1571 = vmatprep.subr.bf16.mxu1 %v1570_v50  ;;  %v1710_v50 = vpack.c.bf16 %v539_v42, %v535_v41  ;;  %v567_v41 = vld [vmem:[#allocation2 + $0x5d8] sm:$0xff] }
  0x60   :  { %v571_v42 = vld [vmem:[#allocation2 + $0x5f8] sm:$0xff] }
  0x61   :  { %1681 = vmatpush1.bf16.msra.mxu0 %v1680_v17  ;;  %v518_v17 = vld [vmem:[#allocation2 + $0x450] sm:$0xff] }
  0x62   :  { %1683 = vmatprep.subr.bf16.mxu0 %v1682_v18  ;;  %v522_v18 = vld [vmem:[#allocation2 + $0x470] sm:$0xff] }
  0x63   :  { %v1704_v29 = vpack.c.bf16 %v522_v18, %v518_v17 }
  0x65   :  { %1685 = vmatpush1.bf16.msra.mxu0 %v1684_v24  ;;  %v527_v24 = vld [vmem:[#allocation2 + $0x498] sm:$0xff] }
  0x66   :  { %1687 = vmatprep.subr.bf16.mxu0 %v1686_v25  ;;  %v531_v25 = vld [vmem:[#allocation2 + $0x4b8] sm:$0xff] }
  0x67   :  { %v1706_v36 = vpack.c.bf16 %v531_v25, %v527_v24  ;;  %v561_v24 = vld [vmem:[#allocation2 + $0x5a8] sm:$0xff]  ;;  %v559_v25 = vld [vmem:[#allocation2 + $0x598] sm:$0xff] }
  0x69   :  { %1689 = vmatpush1.bf16.msra.mxu0 %v1688_v30  ;;  %v524_v30 = vld [vmem:[#allocation2 + $0x480] sm:$0xff] }
  0x6a   :  { %1691 = vmatprep.subr.bf16.mxu0 %v1690_v31  ;;  %v528_v31 = vld [vmem:[#allocation2 + $0x4a0] sm:$0xff] }
  0x6b   :  { %v1580_v45 = vpack.c.bf16 %v528_v31, %v524_v30  ;;  %v560_v30 = vld [vmem:[#allocation2 + $0x5a0] sm:$0xff] }
  0x6d   :  { %1693 = vmatpush1.bf16.msra.mxu0 %v1692_v34  ;;  %v1578_v34 = vpack.c.bf16 %v529_v23, %v525_v19  ;;  %v550_v19 = vld [vmem:[#allocation2 + $0x550] sm:$0xff] }
  0x6e   :  { %1695 = vmatprep.subr.bf16.mxu0 %v1694_v43 }
  0x71   :  { %1697 = vmatpush1.bf16.msra.mxu0 %v1696_v46  ;;  %v532_v46 = vld [vmem:[#allocation2 + $0x4c0] sm:$0xff] }
  0x72   :  { %1699 = vmatprep.subr.bf16.mxu0 %v1698_v52  ;;  %v538_v52 = vld [vmem:[#allocation2 + $0x4f0] sm:$0xff] }
  0x73   :  { %v1712_v63 = vpack.c.bf16 %v538_v52, %v534_v51  ;;  %v573_v51 = vld [vmem:[#allocation2 + $0x608] sm:$0xff] }
  0x74   :  { %v577_v52 = vld [vmem:[#allocation2 + $0x628] sm:$0xff] }
  0xf3   :  { %v203_v58 = vpop.f32.mrb[0].mxu0 }
  0xf4   :  { %v204_v61 = vadd.f32 %v203_v58, %v84_v57  ;;  %v205_v62 = vpop.f32.mrb[1].mxu0  ;;  %v547_v58 = vld [vmem:[#allocation2 + $0x538] sm:$0xff] }
  0xf5   :  { %v206_v3 = vadd.f32 %v205_v62, %v88_v35  ;;  %v1584_v62 = vpack.c.bf16 %v536_v47, %v532_v46  ;;  %v568_v46 = vld [vmem:[#allocation2 + $0x5e0] sm:$0xff]  ;;  %v1598_v47 = vpack.c.bf16 %v569_v40, %v565_v38  ;;  %v603_v38 = vld [vmem:[#allocation2 + $0x6f8] sm:$0xff] }
  0xf6   :  { %v368_v14 = vmax.f32 %v204_v61, 0.0 }
  0xf7   :  { %v369_v7 = vmax.f32 %v206_v3, 0.0  ;;  %v209_v12 = vpop.f32.mrb[2].mxu0 }
  0xf8   :  { %v210_v20 = vadd.f32 %v209_v12, %v84_v57  ;;  %v211_v21 = vpop.f32.mrb[3].mxu0  ;;  %v545_v57 = vld [vmem:[#allocation2 + $0x528] sm:$0xff]  ;;  %v1716_v12 = vpack.c.bf16 %v546_v6, %v542_v5  ;;  %v583_v6 = vld [vmem:[#allocation2 + $0x658] sm:$0xff] }
  0xf9   :  { %722 = vmatprep.mubr.f32.mxu1 %v369_v7  ;;  %876 = vmatprep.mubr.f32.mxu0 %v369_v7  ;;  %v212_v26 = vadd.f32 %v211_v21, %v88_v35  ;;  %v543_v35 = vld [vmem:[#allocation2 + $0x518] sm:$0xff]  ;;  %v1586_v3 = vpack.c.bf16 %v545_v57, %v541_v53  ;;  %v549_v7 = vld [vmem:[#allocation2 + $0x548] sm:$0xff] }
  0xfa   :  { %723 = vmatmul.mubr.f32.vlgmr.msra.gmra.mrb[0].mxu1 %v368_v14  ;;  %877 = vmatmul.mubr.f32.vlgmr.msra.gmra.mrb[12].mxu0 %v368_v14  ;;  %v374_v27 = vmax.f32 %v210_v20, 0.0  ;;  %v1714_v4 = vpack.c.bf16 %v547_v58, %v543_v35  ;;  %v548_v14 = vld [vmem:[#allocation2 + $0x540] sm:$0xff]  ;;  %v554_v20 = vld [vmem:[#allocation2 + $0x570] sm:$0xff]  ;;  %v557_v21 = vld [vmem:[#allocation2 + $0x588] sm:$0xff] }
  0xfb   :  { %1573 = vmatpush1.bf16.msra.mxu1 %v1572_v8  ;;  %1701 = vmatpush1.bf16.msra.mxu0 %v1700_v9  ;;  %v375_v32 = vmax.f32 %v212_v26, 0.0  ;;  %v553_v8 = vld [vmem:[#allocation2 + $0x568] sm:$0xff]  ;;  %v551_v9 = vld [vmem:[#allocation2 + $0x558] sm:$0xff] }
  0xfc   :  { %1575 = vmatprep.subr.bf16.mxu1 %v1574_v15  ;;  %1703 = vmatprep.subr.bf16.mxu0 %v1702_v16  ;;  %v552_v15 = vld [vmem:[#allocation2 + $0x560] sm:$0xff]  ;;  %v1590_v17 = vpack.c.bf16 %v553_v8, %v549_v7  ;;  %v1718_v18 = vpack.c.bf16 %v555_v10, %v551_v9  ;;  %v563_v26 = vld [vmem:[#allocation2 + $0x5b8] sm:$0xff]  ;;  %v585_v5 = vld [vmem:[#allocation2 + $0x668] sm:$0xff] }
  0xfd   :  { %v2154_v43 = vpop.f32.mrb[4].mxu0  ;;  %728 = vmatprep.mubr.f32.mxu1 %v375_v32  ;;  %882 = vmatprep.mubr.f32.mxu0 %v375_v32  ;;  %v1594_v32 = vpack.c.bf16 %v561_v24, %v557_v21  ;;  %v575_v53 = vld [vmem:[#allocation2 + $0x618] sm:$0xff]  ;;  %v580_v10 = vld [vmem:[#allocation2 + $0x640] sm:$0xff] }
  0xfe   :  { %v282_v44 = vpop.f32.mrb[5].mxu0  ;;  %729 = vmatmul.mubr.f32.gmra.mrb[2].mxu1 %v374_v27  ;;  %883 = vmatmul.mubr.f32.gmra.mrb[14].mxu0 %v374_v27  ;;  %v1592_v27 = vpack.c.bf16 %v552_v15, %v548_v14  ;;  %v579_v57 = vld [vmem:[#allocation2 + $0x638] sm:$0xff]  ;;  %v582_v15 = vld [vmem:[#allocation2 + $0x650] sm:$0xff] }
  0xff   :  { %1577 = vmatpush1.bf16.msra.mxu1 %v1576_v28  ;;  %1705 = vmatpush1.bf16.msra.mxu0 %v1704_v29  ;;  %v283_v48 = vadd.f32 %v282_v44, %v2152_v33  ;;  %v1720_v28 = vpack.c.bf16 %v554_v20, %v550_v19  ;;  %v556_v29 = vld [vmem:[#allocation2 + $0x580] sm:$0xff]  ;;  %v1730_v1 = vpack.c.bf16 %v579_v57, %v575_v53  ;;  %v587_v7 = vld [vmem:[#allocation2 + $0x678] sm:$0xff]  ;;  %v593_v19 = vld [vmem:[#allocation2 + $0x6a8] sm:$0xff] }
 0x100   :  { %1579 = vmatprep.subr.bf16.mxu1 %v1578_v34  ;;  %1707 = vmatprep.subr.bf16.mxu0 %v1706_v36  ;;  %v1722_v34 = vpack.c.bf16 %v563_v26, %v559_v25  ;;  %v558_v36 = vld [vmem:[#allocation2 + $0x590] sm:$0xff]  ;;  %v1596_v44 = vpack.c.bf16 %v560_v30, %v556_v29  ;;  %v1734_v14 = vpack.c.bf16 %v587_v7, %v583_v6  ;;  %v591_v20 = vld [vmem:[#allocation2 + $0x698] sm:$0xff]  ;;  %v588_v26 = vld [vmem:[#allocation2 + $0x680] sm:$0xff] }
 0x101   :  { %v371_v59 = vmax.f32 %v283_v48, 0.0  ;;  %v2157_v60 = vpop.f32.mrb[6].mxu0  ;;  %v1726_v48 = vpack.c.bf16 %v571_v42, %v567_v41  ;;  %v595_v21 = vld [vmem:[#allocation2 + $0x6b8] sm:$0xff]  ;;  %v590_v30 = vld [vmem:[#allocation2 + $0x690] sm:$0xff]  ;;  %v596_v42 = vld [vmem:[#allocation2 + $0x6c0] sm:$0xff] }
 0x102   :  { %v2159_v61 = vpop.f32.mrb[7].mxu0  ;;  %v1738_v29 = vpack.c.bf16 %v595_v21, %v591_v20  ;;  %v604_v57 = vld [vmem:[#allocation2 + $0x700] sm:$0xff] }
 0x103   :  { %1581 = vmatpush1.bf16.msra.mxu1 %v1580_v45  ;;  %1709 = vmatpush1.bf16.msra.mxu0 %v1708_v22  ;;  %v1724_v45 = vpack.c.bf16 %v562_v37, %v558_v36  ;;  %v564_v22 = vld [vmem:[#allocation2 + $0x5c0] sm:$0xff]  ;;  %v601_v36 = vld [vmem:[#allocation2 + $0x6e8] sm:$0xff]  ;;  %v599_v37 = vld [vmem:[#allocation2 + $0x6d8] sm:$0xff] }
 0x104   :  { %1583 = vmatprep.subr.bf16.mxu1 %v1582_v49  ;;  %1711 = vmatprep.subr.bf16.mxu0 %v1710_v50  ;;  %v566_v49 = vld [vmem:[#allocation2 + $0x5d0] sm:$0xff]  ;;  %v1600_v35 = vpack.c.bf16 %v568_v46, %v564_v22  ;;  %v1742_v22 = vpack.c.bf16 %v603_v38, %v599_v37  ;;  %v612_v7 = vld [vmem:[#allocation2 + $0x740] sm:$0xff] }
 0x105   :  { %799 = vmatprep.mubr.f32.mxu1 %v371_v59  ;;  %953 = vmatprep.mubr.f32.mxu0 %v371_v59  ;;  %v570_v50 = vld [vmem:[#allocation2 + $0x5f0] sm:$0xff]  ;;  %v572_v59 = vld [vmem:[#allocation2 + $0x600] sm:$0xff] }
 0x106   :  { %v1728_v58 = vpack.c.bf16 %v570_v50, %v566_v49  ;;  %v598_v46 = vld [vmem:[#allocation2 + $0x6d0] sm:$0xff]  ;;  %v609_v49 = vld [vmem:[#allocation2 + $0x728] sm:$0xff]  ;;  %v607_v50 = vld [vmem:[#allocation2 + $0x718] sm:$0xff] }
 0x107   :  { %1585 = vmatpush1.bf16.msra.mxu1 %v1584_v62  ;;  %1713 = vmatpush1.bf16.msra.mxu0 %v1712_v63  ;;  %v2161_v16 = vpop.f32.mrb[8].mxu0  ;;  %v576_v62 = vld [vmem:[#allocation2 + $0x620] sm:$0xff]  ;;  %v1602_v63 = vpack.c.bf16 %v577_v52, %v573_v51  ;;  %v611_v51 = vld [vmem:[#allocation2 + $0x738] sm:$0xff] }
 0x108   :  { %1587 = vmatprep.subr.bf16.mxu1 %v1586_v3  ;;  %1715 = vmatprep.subr.bf16.mxu0 %v1714_v4  ;;  %v2163_v23 = vpop.f32.mrb[9].mxu0  ;;  %v578_v3 = vld [vmem:[#allocation2 + $0x630] sm:$0xff]  ;;  %v581_v4 = vld [vmem:[#allocation2 + $0x648] sm:$0xff]  ;;  %v1604_v8 = vpack.c.bf16 %v576_v62, %v572_v59  ;;  %v1746_v59 = vpack.c.bf16 %v611_v51, %v607_v50  ;;  %v620_v21 = vld [vmem:[#allocation2 + $0x780] sm:$0xff] }
 0x109   :  { %v1732_v9 = vpack.c.bf16 %v578_v3, %v574_v2  ;;  %v606_v62 = vld [vmem:[#allocation2 + $0x710] sm:$0xff]  ;;  %v617_v2 = vld [vmem:[#allocation2 + $0x768] sm:$0xff]  ;;  %v615_v3 = vld [vmem:[#allocation2 + $0x758] sm:$0xff] }
 0x10a   :  { %v1023_v50 = vld [vmem:[%s2521_s5 + $0x188] sm:$0xff] }
 0x10b   :  { %1589 = vmatpush1.bf16.msra.mxu1 %v1588_v11  ;;  %1717 = vmatpush1.bf16.msra.mxu0 %v1716_v12  ;;  %v2165_v31 = vpop.f32.mrb[10].mxu0  ;;  %v584_v11 = vld [vmem:[#allocation2 + $0x660] sm:$0xff]  ;;  %v1606_v12 = vpack.c.bf16 %v585_v5, %v581_v4  ;;  %v619_v4 = vld [vmem:[#allocation2 + $0x778] sm:$0xff] }
 0x10c   :  { %1591 = vmatprep.subr.bf16.mxu1 %v1590_v17  ;;  %1719 = vmatprep.subr.bf16.mxu0 %v1718_v18  ;;  %v2167_v39 = vpop.f32.mrb[11].mxu0  ;;  %v586_v17 = vld [vmem:[#allocation2 + $0x670] sm:$0xff]  ;;  %v589_v18 = vld [vmem:[#allocation2 + $0x688] sm:$0xff]  ;;  %v1608_v24 = vpack.c.bf16 %v584_v11, %v580_v10  ;;  %v1750_v10 = vpack.c.bf16 %v619_v4, %v615_v3  ;;  %v1025_v3 = vld [vmem:[%s2521_s5 + $0x198] sm:$0xff] }
 0x10d   :  { %v1736_v25 = vpack.c.bf16 %v586_v17, %v582_v15  ;;  %v614_v11 = vld [vmem:[#allocation2 + $0x750] sm:$0xff]  ;;  %v625_v15 = vld [vmem:[#allocation2 + $0x7a8] sm:$0xff]  ;;  %v623_v17 = vld [vmem:[#allocation2 + $0x798] sm:$0xff] }
 0x10f   :  { %1593 = vmatpush1.bf16.msra.mxu1 %v1592_v27  ;;  %1721 = vmatpush1.bf16.msra.mxu0 %v1720_v28  ;;  %v592_v27 = vld [vmem:[#allocation2 + $0x6a0] sm:$0xff]  ;;  %v1610_v28 = vpack.c.bf16 %v593_v19, %v589_v18  ;;  %v627_v18 = vld [vmem:[#allocation2 + $0x7b8] sm:$0xff] }
 0x110   :  { %1595 = vmatprep.subr.bf16.mxu1 %v1594_v32  ;;  %1723 = vmatprep.subr.bf16.mxu0 %v1722_v34  ;;  %v594_v32 = vld [vmem:[#allocation2 + $0x6b0] sm:$0xff]  ;;  %v597_v34 = vld [vmem:[#allocation2 + $0x6c8] sm:$0xff]  ;;  %v1612_v40 = vpack.c.bf16 %v592_v27, %v588_v26  ;;  %v1754_v27 = vpack.c.bf16 %v627_v18, %v623_v17  ;;  %v1026_v18 = vld [vmem:[%s2521_s5 + $0x1a0] sm:$0xff] }
 0x111   :  { %v1740_v41 = vpack.c.bf16 %v594_v32, %v590_v30  ;;  %v629_v30 = vld [vmem:[#allocation2 + $0x7c8] sm:$0xff] }
 0x112   :  { %v633_v32 = vld [vmem:[#allocation2 + $0x7e8] sm:$0xff] }
 0x113   :  { %1597 = vmatpush1.bf16.msra.mxu1 %v1596_v44  ;;  %1725 = vmatpush1.bf16.msra.mxu0 %v1724_v45  ;;  %v600_v44 = vld [vmem:[#allocation2 + $0x6e0] sm:$0xff]  ;;  %v1614_v45 = vpack.c.bf16 %v601_v36, %v597_v34  ;;  %v631_v34 = vld [vmem:[#allocation2 + $0x7d8] sm:$0xff]  ;;  %v995_v17 = vld [vmem:[%s2521_s5 + $0xa8] sm:$0xff] }
 0x114   :  { %1599 = vmatprep.subr.bf16.mxu1 %v1598_v47  ;;  %1727 = vmatprep.subr.bf16.mxu0 %v1726_v48  ;;  %v602_v47 = vld [vmem:[#allocation2 + $0x6f0] sm:$0xff]  ;;  %v605_v48 = vld [vmem:[#allocation2 + $0x708] sm:$0xff]  ;;  %v1616_v52 = vpack.c.bf16 %v600_v44, %v596_v42  ;;  %v635_v36 = vld [vmem:[#allocation2 + $0x7f8] sm:$0xff]  ;;  %v1630_v44 = vpack.c.bf16 %v633_v32, %v629_v30 }
 0x115   :  { %v1744_v53 = vpack.c.bf16 %v602_v47, %v598_v46  ;;  %v634_v46 = vld [vmem:[#allocation2 + $0x7f0] sm:$0xff]  ;;  %v990_v47 = vld [vmem:[%s2521_s5 + $0x80] sm:$0xff]  ;;  %v1011_v30 = vld [vmem:[%s2521_s5 + $0x128] sm:$0xff] }
 0x116   :  { %v996_v32 = vld [vmem:[%s2521_s5 + $0xb0] sm:$0xff] }
 0x117   :  { %1601 = vmatpush1.bf16.msra.mxu1 %v1600_v35  ;;  %1729 = vmatpush1.bf16.msra.mxu0 %v1728_v58  ;;  %v608_v35 = vld [vmem:[#allocation2 + $0x720] sm:$0xff]  ;;  %v1618_v58 = vpack.c.bf16 %v609_v49, %v605_v48  ;;  %v991_v48 = vld [vmem:[%s2521_s5 + $0x88] sm:$0xff] }
 0x118   :  { %1603 = vmatprep.subr.bf16.mxu1 %v1602_v63  ;;  %1731 = vmatprep.subr.bf16.mxu0 %v1730_v1  ;;  %v610_v63 = vld [vmem:[#allocation2 + $0x730] sm:$0xff]  ;;  %v613_v1 = vld [vmem:[#allocation2 + $0x748] sm:$0xff]  ;;  %v1620_v5 = vpack.c.bf16 %v608_v35, %v604_v57  ;;  %v1022_v49 = vld [vmem:[%s2521_s5 + $0x180] sm:$0xff]  ;;  %v1762_v35 = vpack.c.bf16 %v991_v48, %v990_v47 }
 0x119   :  { %v1748_v6 = vpack.c.bf16 %v610_v63, %v606_v62  ;;  %v1794_v62 = vpack.c.bf16 %v1023_v50, %v1022_v49  ;;  %v1006_v63 = vld [vmem:[%s2521_s5 + $0x100] sm:$0xff]  ;;  %v999_v48 = vld [vmem:[%s2521_s5 + $0xc8] sm:$0xff] }
 0x11a   :  { %v998_v47 = vld [vmem:[%s2521_s5 + $0xc0] sm:$0xff]  ;;  %v1031_v50 = vld [vmem:[%s2521_s5 + $0x1c8] sm:$0xff] }
 0x11b   :  { %1605 = vmatpush1.bf16.msra.mxu1 %v1604_v8  ;;  %1733 = vmatpush1.bf16.msra.mxu0 %v1732_v9  ;;  %v616_v8 = vld [vmem:[#allocation2 + $0x760] sm:$0xff]  ;;  %v1622_v9 = vpack.c.bf16 %v617_v2, %v613_v1  ;;  %v993_v1 = vld [vmem:[%s2521_s5 + $0x98] sm:$0xff]  ;;  %v1024_v2 = vld [vmem:[%s2521_s5 + $0x190] sm:$0xff] }
 0x11c   :  { %1607 = vmatprep.subr.bf16.mxu1 %v1606_v12  ;;  %1735 = vmatprep.subr.bf16.mxu0 %v1734_v14  ;;  %v618_v12 = vld [vmem:[#allocation2 + $0x770] sm:$0xff]  ;;  %v621_v14 = vld [vmem:[#allocation2 + $0x788] sm:$0xff]  ;;  %v1624_v19 = vpack.c.bf16 %v616_v8, %v612_v7  ;;  %v977_v8 = vld [vmem:[%s2521_s5 + $0x18] sm:$0xff] }
 0x11d   :  { %v1752_v20 = vpack.c.bf16 %v618_v12, %v614_v11  ;;  %v1626_v26 = vpack.c.bf16 %v625_v15, %v621_v14  ;;  %v976_v7 = vld [vmem:[%s2521_s5 + $0x10] sm:$0xff]  ;;  %v1009_v12 = vld [vmem:[%s2521_s5 + $0x118] sm:$0xff]  ;;  %v994_v14 = vld [vmem:[%s2521_s5 + $0xa0] sm:$0xff] }
 0x11e   :  { %v1008_v11 = vld [vmem:[%s2521_s5 + $0x110] sm:$0xff]  ;;  %v1030_v49 = vld [vmem:[%s2521_s5 + $0x1c0] sm:$0xff] }
 0x11f   :  { %1609 = vmatpush1.bf16.msra.mxu1 %v1608_v24  ;;  %1737 = vmatpush1.bf16.msra.mxu0 %v1736_v25  ;;  %v624_v24 = vld [vmem:[#allocation2 + $0x7a0] sm:$0xff]  ;;  %v91_v25 = vsub.s32 2, %v2133_v54 }
 0x120   :  { %1611 = vmatprep.subr.bf16.mxu1 %v1610_v28  ;;  %1739 = vmatprep.subr.bf16.mxu0 %v1738_v29  ;;  %v622_v28 = vld [vmem:[#allocation2 + $0x790] sm:$0xff]  ;;  %v1628_v37 = vpack.c.bf16 %v624_v24, %v620_v21  ;;  %v1800_v21 = vpack.c.bf16 %v1009_v12, %v1008_v11  ;;  %v978_v24 = vld [vmem:[%s2521_s5 + $0x20] sm:$0xff]  ;;  %v1035_v11 = vld [vmem:[%s2521_s5 + $0x1e8] sm:$0xff] }
 0x121   :  { %v626_v29 = vld [vmem:[#allocation2 + $0x7b0] sm:$0xff]  ;;  %v92_v42 = vrot.slane %v2139_v56, %v91_v25 }
 0x122   :  { %v1756_v38 = vpack.c.bf16 %v626_v29, %v622_v28  ;;  %v1010_v29 = vld [vmem:[%s2521_s5 + $0x120] sm:$0xff] }
 0x123   :  { %1613 = vmatpush1.bf16.msra.mxu1 %v1612_v40  ;;  %1741 = vmatpush1.bf16.msra.mxu0 %v1740_v41  ;;  %v628_v40 = vld [vmem:[#allocation2 + $0x7c0] sm:$0xff]  ;;  %v281_v57 = vadd.f32 %v2154_v43, %v92_v42  ;;  %v992_v43 = vld [vmem:[%s2521_s5 + $0x90] sm:$0xff] }
 0x124   :  { %1615 = vmatprep.subr.bf16.mxu1 %v1614_v45  ;;  %1743 = vmatprep.subr.bf16.mxu0 %v1742_v22  ;;  %v632_v41 = vld [vmem:[#allocation2 + $0x7e0] sm:$0xff]  ;;  %v1758_v45 = vpack.c.bf16 %v635_v36, %v631_v34  ;;  %v630_v22 = vld [vmem:[#allocation2 + $0x7d0] sm:$0xff]  ;;  %v997_v34 = vld [vmem:[%s2521_s5 + $0xb8] sm:$0xff] }
 0x125   :  { %v1632_v51 = vpack.c.bf16 %v632_v41, %v628_v40  ;;  %v1028_v36 = vld [vmem:[%s2521_s5 + $0x1b0] sm:$0xff]  ;;  %v1804_v40 = vpack.c.bf16 %v1011_v30, %v1010_v29 }
 0x126   :  { %v980_v41 = vld [vmem:[%s2521_s5 + $0x30] sm:$0xff] }
 0x127   :  { %1617 = vmatpush1.bf16.msra.mxu1 %v1616_v52  ;;  %1745 = vmatpush1.bf16.msra.mxu0 %v1744_v53  ;;  %v1760_v52 = vpack.c.bf16 %v634_v46, %v630_v22  ;;  %v289_v53 = vadd.f32 %v2159_v61, %v2152_v33  ;;  %v1007_v33 = vld [vmem:[%s2521_s5 + $0x108] sm:$0xff]  ;;  %v287_v61 = vadd.f32 %v2157_v60, %v92_v42  ;;  %v981_v42 = vld [vmem:[%s2521_s5 + $0x38] sm:$0xff]  ;;  %v1012_v22 = vld [vmem:[%s2521_s5 + $0x130] sm:$0xff] }
 0x128   :  { %1619 = vmatprep.subr.bf16.mxu1 %v1618_v58  ;;  %1747 = vmatprep.subr.bf16.mxu0 %v1746_v59  ;;  %v974_v58 = vld [vmem:[%s2521_s5] sm:$0xff]  ;;  %v975_v59 = vld [vmem:[%s2521_s5 + $0x8] sm:$0xff]  ;;  %v1796_v60 = vpack.c.bf16 %v1007_v33, %v1006_v63  ;;  %v1013_v46 = vld [vmem:[%s2521_s5 + $0x138] sm:$0xff] }
 0x129   :  { %v377_v4 = vmax.f32 %v289_v53, 0.0  ;;  %v376_v15 = vmax.f32 %v287_v61, 0.0  ;;  %v982_v53 = vld [vmem:[%s2521_s5 + $0x40] sm:$0xff]  ;;  %v1000_v63 = vld [vmem:[%s2521_s5 + $0xd0] sm:$0xff]  ;;  %v1001_v33 = vld [vmem:[%s2521_s5 + $0xd8] sm:$0xff] }
 0x12a   :  { %v1033_v61 = vld [vmem:[%s2521_s5 + $0x1d8] sm:$0xff]  ;;  %v988_v30 = vld [vmem:[%s2521_s5 + $0x70] sm:$0xff] }
 0x12b   :  { %1621 = vmatpush1.bf16.msra.mxu1 %v1620_v5  ;;  %1749 = vmatpush1.bf16.msra.mxu0 %v1748_v6  ;;  %v370_v5 = vmax.f32 %v281_v57, 0.0  ;;  %v1764_v6 = vpack.c.bf16 %v975_v59, %v974_v58  ;;  %v983_v57 = vld [vmem:[%s2521_s5 + $0x48] sm:$0xff]  ;;  %v1810_v58 = vpack.c.bf16 %v1031_v50, %v1030_v49  ;;  %v1014_v59 = vld [vmem:[%s2521_s5 + $0x140] sm:$0xff]  ;;  %v103_v49 = vsub.s32 5, %v2133_v54 }
 0x12c   :  { %1623 = vmatprep.subr.bf16.mxu1 %v1622_v9  ;;  %1751 = vmatprep.subr.bf16.mxu0 %v1750_v10  ;;  %v1766_v9 = vpack.c.bf16 %v993_v1, %v992_v43  ;;  %v1798_v10 = vpack.c.bf16 %v1025_v3, %v1024_v2  ;;  %v1032_v43 = vld [vmem:[%s2521_s5 + $0x1d0] sm:$0xff]  ;;  %v1780_v1 = vpack.c.bf16 %v983_v57, %v982_v53  ;;  %v1199_v57 = vld [vmem:[%s2523_s7] sm:$0xff] }
 0x12d   :  { %v984_v3 = vld [vmem:[%s2521_s5 + $0x50] sm:$0xff] }
 0x12f   :  { %1625 = vmatpush1.bf16.msra.mxu1 %v1624_v19  ;;  %1753 = vmatpush1.bf16.msra.mxu0 %v1752_v20  ;;  %v1027_v19 = vld [vmem:[%s2521_s5 + $0x1a8] sm:$0xff]  ;;  %v1768_v20 = vpack.c.bf16 %v977_v8, %v976_v7  ;;  %v1017_v7 = vld [vmem:[%s2521_s5 + $0x158] sm:$0xff]  ;;  %v1002_v8 = vld [vmem:[%s2521_s5 + $0xe0] sm:$0xff] }
 0x130   :  { %1627 = vmatprep.subr.bf16.mxu1 %v1626_v26  ;;  %1755 = vmatprep.subr.bf16.mxu0 %v1754_v27  ;;  %v979_v26 = vld [vmem:[%s2521_s5 + $0x28] sm:$0xff]  ;;  %v1770_v27 = vpack.c.bf16 %v995_v17, %v994_v14  ;;  %v1802_v28 = vpack.c.bf16 %v1027_v19, %v1026_v18  ;;  %v986_v17 = vld [vmem:[%s2521_s5 + $0x60] sm:$0xff] }
 0x131   :  { %v987_v18 = vld [vmem:[%s2521_s5 + $0x68] sm:$0xff] }
 0x133   :  { %1629 = vmatpush1.bf16.msra.mxu1 %v1628_v37  ;;  %1757 = vmatpush1.bf16.msra.mxu0 %v1756_v38  ;;  %v1029_v37 = vld [vmem:[%s2521_s5 + $0x1b8] sm:$0xff]  ;;  %v1772_v38 = vpack.c.bf16 %v979_v26, %v978_v24  ;;  %v1019_v24 = vld [vmem:[%s2521_s5 + $0x168] sm:$0xff] }
 0x134   :  { %1631 = vmatprep.subr.bf16.mxu1 %v1630_v44  ;;  %1759 = vmatprep.subr.bf16.mxu0 %v1758_v45  ;;  %v1774_v44 = vpack.c.bf16 %v997_v34, %v996_v32  ;;  %v1806_v45 = vpack.c.bf16 %v1029_v37, %v1028_v36  ;;  %v989_v32 = vld [vmem:[%s2521_s5 + $0x78] sm:$0xff]  ;;  %v1036_v34 = vld [vmem:[%s2521_s5 + $0x1f0] sm:$0xff] }
 0x135   :  { %v1792_v36 = vpack.c.bf16 %v989_v32, %v988_v30  ;;  %v1037_v37 = vld [vmem:[%s2521_s5 + $0x1f8] sm:$0xff] }
 0x136   :  { %v1222_v30 = vld [vmem:[%s2523_s7 + $0xb8] sm:$0xff] }
 0x137   :  { %1633 = vmatpush1.bf16.msra.mxu1 %v1632_v51  ;;  %1761 = vmatpush1.bf16.msra.mxu0 %v1760_v52  ;;  %v1776_v51 = vpack.c.bf16 %v981_v42, %v980_v41  ;;  %v1808_v52 = vpack.c.bf16 %v1013_v46, %v1012_v22  ;;  %v1822_v41 = vpack.c.bf16 %v1037_v37, %v1036_v34  ;;  %v636_v46 = vld [vmem:[%s2520_s4] sm:$0xf]  ;;  %v1206_v37 = vld [vmem:[%s2523_s7 + $0x38] sm:$0xff] }
 0x138   :  { %1763 = vmatprep.subr.bf16.mxu1 %v1762_v35  ;;  %1795 = vmatprep.subr.bf16.mxu0 %v1794_v62  ;;  %v1778_v35 = vpack.c.bf16 %v999_v48, %v998_v47  ;;  %v1015_v62 = vld [vmem:[%s2521_s5 + $0x148] sm:$0xff]  ;;  %v641_v47 = vrot.slane %v636_v46, %v83_v55  ;;  %v649_v48 = vrot.slane %v636_v46, %v91_v25 }
 0x139   :  { %v1812_v2 = vpack.c.bf16 %v1015_v62, %v1014_v59  ;;  %v645_v50 = vrot.slane %v636_v46, %v87_v0  ;;  %v1200_v25 = vld [vmem:[%s2523_s7 + $0x8] sm:$0xff]  ;;  %v1217_v0 = vld [vmem:[%s2523_s7 + $0x90] sm:$0xff]  ;;  %v2400_v62 = vrot.slane %v2139_v56, %v103_v49  ;;  %v1202_v56 = vld [vmem:[%s2523_s7 + $0x18] sm:$0xff] }
 0x13a   :  { %800 = vmatmul.mubr.f32.vlgmr.msra.gmra.mrb[0].mxu1 %v370_v5  ;;  %954 = vmatmul.mubr.f32.vlgmr.msra.gmra.mrb[12].mxu0 %v370_v5  ;;  %v1782_v5 = vpack.c.bf16 %v1001_v33, %v1000_v63  ;;  %v1209_v49 = vld [vmem:[%s2523_s7 + $0x50] sm:$0xff] }
 0x13b   :  { %805 = vmatprep.mubr.f32.mxu1 %v377_v4  ;;  %959 = vmatprep.mubr.f32.mxu0 %v377_v4  ;;  %v985_v4 = vld [vmem:[%s2521_s5 + $0x58] sm:$0xff] }
 0x13c   :  { %1765 = vmatpush3.bf16.msra.mxu1 %v1764_v6  ;;  %1797 = vmatpush3.bf16.msra.mxu0 %v1796_v60  ;;  %v1814_v6 = vpack.c.bf16 %v1033_v61, %v1032_v43  ;;  %v1016_v60 = vld [vmem:[%s2521_s5 + $0x150] sm:$0xff]  ;;  %v1784_v12 = vpack.c.bf16 %v985_v4, %v984_v3  ;;  %v1828_v3 = vpack.c.bf16 %v1200_v25, %v1199_v57  ;;  %v99_v57 = vsub.s32 4, %v2133_v54  ;;  %v1230_v25 = vld [vmem:[%s2523_s7 + $0xf8] sm:$0xff] }
 0x13d   :  { %1767 = vmatprep.subr.bf16.mxu1 %v1766_v9  ;;  %1799 = vmatprep.subr.bf16.mxu0 %v1798_v10  ;;  %v1003_v9 = vld [vmem:[%s2521_s5 + $0xe8] sm:$0xff]  ;;  %v1034_v10 = vld [vmem:[%s2521_s5 + $0x1e0] sm:$0xff]  ;;  %v1816_v14 = vpack.c.bf16 %v1017_v7, %v1016_v60 }
 0x13e   :  { %806 = vmatmul.mubr.f32.gmra.mrb[2].mxu1 %v376_v15  ;;  %960 = vmatmul.mubr.f32.gmra.mrb[14].mxu0 %v376_v15  ;;  %v1786_v15 = vpack.c.bf16 %v1003_v9, %v1002_v8  ;;  %v1818_v19 = vpack.c.bf16 %v1035_v11, %v1034_v10  ;;  %v1201_v10 = vld [vmem:[%s2523_s7 + $0x10] sm:$0xff]  ;;  %v360_v11 = vadd.f32 %v2163_v23, %v2400_v62 }
 0x140   :  { %1769 = vmatpush3.bf16.msra.mxu1 %v1768_v20  ;;  %1801 = vmatpush3.bf16.msra.mxu0 %v1800_v21  ;;  %v1788_v20 = vpack.c.bf16 %v987_v18, %v986_v17  ;;  %v1018_v21 = vld [vmem:[%s2521_s5 + $0x160] sm:$0xff]  ;;  %v1220_v17 = vld [vmem:[%s2523_s7 + $0xa8] sm:$0xff] }
 0x141   :  { %1771 = vmatprep.subr.bf16.mxu1 %v1770_v27  ;;  %1803 = vmatprep.subr.bf16.mxu0 %v1802_v28  ;;  %v1820_v26 = vpack.c.bf16 %v1019_v24, %v1018_v21  ;;  %v1004_v27 = vld [vmem:[%s2521_s5 + $0xf0] sm:$0xff]  ;;  %v1005_v28 = vld [vmem:[%s2521_s5 + $0xf8] sm:$0xff] }
 0x142   :  { %v1790_v29 = vpack.c.bf16 %v1005_v28, %v1004_v27  ;;  %v1204_v27 = vld [vmem:[%s2523_s7 + $0x28] sm:$0xff]  ;;  %v373_v28 = vmax.f32 %v360_v11, 0.0 }
 0x144   :  { %1773 = vmatpush3.bf16.msra.mxu1 %v1772_v38  ;;  %1805 = vmatpush3.bf16.msra.mxu0 %v1804_v40  ;;  %v1020_v38 = vld [vmem:[%s2521_s5 + $0x170] sm:$0xff]  ;;  %v1021_v40 = vld [vmem:[%s2521_s5 + $0x178] sm:$0xff] }
 0x145   :  { %1775 = vmatprep.subr.bf16.mxu1 %v1774_v44  ;;  %1807 = vmatprep.subr.bf16.mxu0 %v1806_v45  ;;  %v1824_v42 = vpack.c.bf16 %v1021_v40, %v1020_v38  ;;  %v1215_v44 = vld [vmem:[%s2523_s7 + $0x80] sm:$0xff]  ;;  %v1216_v45 = vld [vmem:[%s2523_s7 + $0x88] sm:$0xff] }
 0x146   :  { %v1826_v22 = vpack.c.bf16 %v1216_v45, %v1215_v44  ;;  %v1223_v38 = vld [vmem:[%s2523_s7 + $0xc0] sm:$0xff]  ;;  %v1224_v40 = vld [vmem:[%s2523_s7 + $0xc8] sm:$0xff] }
 0x147   :  { %v1207_v44 = vld [vmem:[%s2523_s7 + $0x40] sm:$0xff]  ;;  %v1208_v45 = vld [vmem:[%s2523_s7 + $0x48] sm:$0xff] }
 0x148   :  { %1777 = vmatpush3.bf16.msra.mxu1 %v1776_v51  ;;  %1809 = vmatpush3.bf16.msra.mxu0 %v1808_v52  ;;  %v653_v51 = vrot.slane %v636_v46, %v95_v13  ;;  %v1218_v13 = vld [vmem:[%s2523_s7 + $0x98] sm:$0xff] }
 0x149   :  { %1779 = vmatprep.subr.bf16.mxu1 %v1778_v35  ;;  %1811 = vmatprep.subr.bf16.mxu0 %v1810_v58  ;;  %v1830_v4 = vpack.c.bf16 %v1218_v13, %v1217_v0  ;;  %v1226_v46 = vld [vmem:[%s2523_s7 + $0xd8] sm:$0xff]  ;;  %v1889_v0 = vld [vmem:[%s2518_s2] sm:$0x3f] }
 0x14a   :  { %v100_v13 = vrot.slane %v1889_v0, %v99_v57 }
 0x14c   :  { %1781 = vmatpush3.bf16.msra.mxu1 %v1780_v1  ;;  %1813 = vmatpush3.bf16.msra.mxu0 %v1812_v2 }
 0x14d   :  { %1783 = vmatprep.subr.bf16.mxu1 %v1782_v5  ;;  %1815 = vmatprep.subr.bf16.mxu0 %v1814_v6 }
 0x150   :  { %1785 = vmatpush3.bf16.msra.mxu1 %v1784_v12  ;;  %1817 = vmatpush3.bf16.msra.mxu0 %v1816_v14 }
 0x151   :  { %1787 = vmatprep.subr.bf16.mxu1 %v1786_v15  ;;  %1819 = vmatprep.subr.bf16.mxu0 %v1818_v19  ;;  %v1219_v15 = vld [vmem:[%s2523_s7 + $0xa0] sm:$0xff] }
 0x152   :  { %v1834_v24 = vpack.c.bf16 %v1220_v17, %v1219_v15 }
 0x154   :  { %1789 = vmatpush3.bf16.msra.mxu1 %v1788_v20  ;;  %1821 = vmatpush3.bf16.msra.mxu0 %v1820_v26  ;;  %v1832_v20 = vpack.c.bf16 %v1202_v56, %v1201_v10  ;;  %v1203_v26 = vld [vmem:[%s2523_s7 + $0x20] sm:$0xff] }
 0x155   :  { %1791 = vmatprep.subr.bf16.mxu1 %v1790_v29  ;;  %1823 = vmatprep.subr.bf16.mxu0 %v1822_v41  ;;  %v1221_v29 = vld [vmem:[%s2523_s7 + $0xb0] sm:$0xff]  ;;  %v1836_v32 = vpack.c.bf16 %v1204_v27, %v1203_v26 }
 0x156   :  { %v1838_v34 = vpack.c.bf16 %v1222_v30, %v1221_v29 }
 0x158   :  { %1793 = vmatpush3.bf16.msra.mxu1 %v1792_v36  ;;  %1825 = vmatpush3.bf16.msra.mxu0 %v1824_v42  ;;  %v1205_v36 = vld [vmem:[%s2523_s7 + $0x30] sm:$0xff]  ;;  %v1842_v42 = vpack.c.bf16 %v1224_v40, %v1223_v38 }
 0x159   :  { %1827 = vmatprep.subr.bf16.mxu1 %v1826_v22  ;;  %v1840_v41 = vpack.c.bf16 %v1206_v37, %v1205_v36  ;;  %v1225_v22 = vld [vmem:[%s2523_s7 + $0xd0] sm:$0xff] }
 0x20d   :  { %v801_v52 = vpop.f32.mrb[0].mxu1  ;;  %v955_v53 = vpop.f32.mrb[12].mxu0 }
 0x20e   :  { %v1858_v35 = vadd.f32 %v801_v52, %v641_v47  ;;  %v1862_v58 = vadd.f32 %v955_v53, %v649_v48  ;;  %v803_v55 = vpop.f32.mrb[1].mxu1  ;;  %v957_v59 = vpop.f32.mrb[13].mxu0  ;;  %v1228_v52 = vld [vmem:[%s2523_s7 + $0xe8] sm:$0xff] }
 0x20f   :  { %v1859_v63 = vadd.f32 %v803_v55, %v645_v50  ;;  %v1863_v33 = vadd.f32 %v957_v59, %v653_v51  ;;  %v1212_v55 = vld [vmem:[%s2523_s7 + $0x68] sm:$0xff]  ;;  %v1229_v59 = vld [vmem:[%s2523_s7 + $0xf0] sm:$0xff] }
 0x210   :  { %v966_v5 = vmax.f32 %v1858_v35, 0.0  ;;  %v968_v6 = vmax.f32 %v1862_v58, 0.0  ;;  %v1211_v58 = vld [vmem:[%s2523_s7 + $0x60] sm:$0xff] }
 0x211   :  { %v967_v43 = vmax.f32 %v1859_v63, 0.0  ;;  %v969_v61 = vmax.f32 %v1863_v33, 0.0  ;;  %v807_v1 = vpop.f32.mrb[2].mxu1  ;;  %v961_v2 = vpop.f32.mrb[14].mxu0  ;;  %v1852_v54 = vpack.c.bf16 %v1212_v55, %v1211_v58  ;;  %v1854_v63 = vpack.c.bf16 %v1230_v25, %v1229_v59  ;;  %v1213_v33 = vld [vmem:[%s2523_s7 + $0x70] sm:$0xff] }
 0x212   :  { %v1860_v60 = vadd.f32 %v807_v1, %v641_v47  ;;  %v1864_v7 = vadd.f32 %v961_v2, %v649_v48  ;;  %v809_v8 = vpop.f32.mrb[3].mxu1  ;;  %v963_v9 = vpop.f32.mrb[15].mxu0  ;;  %v1844_v47 = vpack.c.bf16 %v1208_v45, %v1207_v44  ;;  %v1846_v48 = vpack.c.bf16 %v1226_v46, %v1225_v22  ;;  %v1891_v45 = vld [vmem:[%s2516_s0 + $0x8] sm:$0xff] }
 0x213   :  { %v1861_v12 = vadd.f32 %v809_v8, %v645_v50  ;;  %v1865_v14 = vadd.f32 %v963_v9, %v653_v51  ;;  %1109 = vmatprep.mubr.f32.mxu1 %v967_v43  ;;  %1184 = vmatprep.mubr.f32.mxu0 %v969_v61  ;;  %v1210_v50 = vld [vmem:[%s2523_s7 + $0x58] sm:$0xff]  ;;  %v1227_v51 = vld [vmem:[%s2523_s7 + $0xe0] sm:$0xff]  ;;  %v358_v1 = vadd.f32 %v2161_v16, %v100_v13  ;;  %v1196_v22 = vmul.f32 0.1, %v1891_v45 }
 0x214   :  { %1110 = vmatmul.mubr.f32.vlgmr.msra.gmra.mrb[4].mxu1 %v966_v5  ;;  %1185 = vmatmul.mubr.f32.vlgmr.msra.gmra.mrb[16].mxu0 %v968_v6  ;;  %v970_v21 = vmax.f32 %v1860_v60, 0.0  ;;  %v972_v23 = vmax.f32 %v1864_v7, 0.0  ;;  %v1848_v53 = vpack.c.bf16 %v1210_v50, %v1209_v49  ;;  %v1850_v35 = vpack.c.bf16 %v1228_v52, %v1227_v51  ;;  %v1214_v43 = vld [vmem:[%s2523_s7 + $0x78] sm:$0xff]  ;;  %v1364_v8 = vld [vmem:[%s2522_s6] ss:$0 sm:$0xff] }
 0x215   :  { %v971_v18 = vmax.f32 %v1861_v12, 0.0  ;;  %v973_v19 = vmax.f32 %v1865_v14, 0.0  ;;  %1829 = vmatpush3.bf16.msra.mxu1 %v1828_v3  ;;  %v1856_v61 = vpack.c.bf16 %v1214_v43, %v1213_v33  ;;  %v366_v2 = vadd.f32 %v2167_v39, %v2400_v62 }
 0x216   :  { %1831 = vmatprep.subr.bf16.mxu1 %v1830_v4  ;;  %v372_v3 = vmax.f32 %v358_v1, 0.0  ;;  %v364_v4 = vadd.f32 %v2165_v31, %v100_v13 }
 0x217   :  { %1114 = vmatprep.mubr.f32.mxu1 %v971_v18  ;;  %1189 = vmatprep.mubr.f32.mxu0 %v973_v19  ;;  %v379_v5 = vmax.f32 %v366_v2, 0.0 }
 0x218   :  { %1115 = vmatmul.mubr.f32.gmra.mrb[6].mxu1 %v970_v21  ;;  %1190 = vmatmul.mubr.f32.gmra.mrb[18].mxu0 %v972_v23  ;;  %v378_v6 = vmax.f32 %v364_v4, 0.0  ;;  %v1365_v21 = vld [vmem:[%s2524_s8] ss:$0 sm:$0xff] }
 0x219   :  { %1833 = vmatpush3.bf16.msra.mxu1 %v1832_v20  ;;  %1302 = vmatprep.mubr.f32.mxu1 %v373_v28 }
 0x21a   :  { %1835 = vmatprep.subr.bf16.mxu1 %v1834_v24 }
 0x21d   :  { %1837 = vmatpush3.bf16.msra.mxu1 %v1836_v32 }
 0x21e   :  { %1839 = vmatprep.subr.bf16.mxu1 %v1838_v34 }
 0x221   :  { %1841 = vmatpush3.bf16.msra.mxu1 %v1840_v41  ;;  %v1890_v41 = vld [vmem:[%s2516_s0] sm:$0xff]  ;;  %s1914_s0 = scalar_lea.vmem %s1341_s11, 256 }
 0x222   :  { %1843 = vmatprep.subr.bf16.mxu1 %v1842_v42  ;;  %v1195_v42 = vmul.f32 0.1, %v1890_v41  ;;  %p1915_p8 = scmp.ne.s32.totalorder %s1341_s11, %s1914_s0  ;;  %p1920_p10 = scmp.lt.s32.totalorder %s1914_s0, %s1914_s0 }
 0x224   :  { %p1921_p11 = por %p1920_p10, %p1919_p9 }
 0x225   :  { %1845 = vmatpush3.bf16.msra.mxu1 %v1844_v47 }
 0x226   :  { %1847 = vmatprep.subr.bf16.mxu1 %v1846_v48  ;;  %p1922_p12 = pnand %p1921_p11, %p1915_p8 }
 0x229   :  { %1849 = vmatpush3.bf16.msra.mxu1 %v1848_v53 }
 0x22a   :  { %1851 = vmatprep.subr.bf16.mxu1 %v1850_v35 }
 0x22d   :  { %1853 = vmatpush3.bf16.msra.mxu1 %v1852_v54 }
 0x22e   :  { %1855 = vmatprep.subr.bf16.mxu1 %v1854_v63 }
 0x231   :  { %1857 = vmatpush3.bf16.msra.mxu1 %v1856_v61 }
 0x234   :  { %1303 = vmatmul.mubr.f32.vlgmr.msra.gmra.mrb[8].mxu1 %v372_v3 }
 0x235   :  { %1307 = vmatprep.mubr.f32.mxu1 %v379_v5 }
 0x238   :  { %1308 = vmatmul.mubr.f32.gmra.mrb[10].mxu1 %v378_v6 }
 0x2e7   :  { %v1400_v60 = vpop.f32.mrb[4].mxu1  ;;  %v1438_v7 = vpop.f32.mrb[16].mxu0 }
 0x2e8   :  { %v1401_v16 = vpop.f32.mrb[5].mxu1  ;;  %v1439_v9 = vpop.f32.mrb[17].mxu0 }
 0x2e9   :  { %v1402_v10 = vadd.f32 %v1401_v16, %v1400_v60  ;;  %v1440_v56 = vadd.f32 %v1439_v9, %v1438_v7 }
 0x2eb   :  { %v1112_v39 = vadd.f32 %v1402_v10, %v1364_v8  ;;  %v1403_v62 = vpop.f32.mrb[6].mxu1  ;;  %v1441_v11 = vpop.f32.mrb[18].mxu0 }
 0x2ec   :  { %v1404_v12 = vpop.f32.mrb[7].mxu1  ;;  %v1442_v31 = vpop.f32.mrb[19].mxu0 }
 0x2ed   :  { %v1187_v14 = vadd.f32 %v1440_v56, %v1112_v39  ;;  %v1405_v15 = vadd.f32 %v1404_v12, %v1403_v62  ;;  %v1443_v17 = vadd.f32 %v1442_v31, %v1441_v11 }
 0x2ef   :  { %v1117_v18 = vadd.f32 %v1405_v15, %v1364_v8  ;;  %v1197_v44 = vadd.f32 %v1195_v42, %v1187_v14 }
 0x2f1   :  { %v1192_v19 = vadd.f32 %v1443_v17, %v1117_v18 }
 0x2f3   :  { %v1198_v49 = vadd.f32 %v1196_v22, %v1192_v19 }
 0x307   :  { %v1476_v20 = vpop.f32.mrb[8].mxu1 }
 0x308   :  { %v1477_v23 = vpop.f32.mrb[9].mxu1 }
 0x309   :  { %v1478_v24 = vadd.f32 %v1477_v23, %v1476_v20 }
 0x30b   :  { %v1305_v26 = vadd.f32 %v1478_v24, %v1365_v21  ;;  %v1479_v27 = vpop.f32.mrb[10].mxu1 }
 0x30c   :  { %v1480_v28 = vpop.f32.mrb[11].mxu1 }
 0x30d   :  { %v1366_v29 = vmul.f32 -1.442695, %v1305_v26  ;;  %v1481_v30 = vadd.f32 %v1480_v28, %v1479_v27 }
 0x30f   :  { %1881 = vpow2.f32 %v1366_v29  ;;  %v1310_v32 = vadd.f32 %v1481_v30, %v1365_v21 }
 0x311   :  { %v1367_v34 = vmul.f32 -1.442695, %v1310_v32 }
 0x313   :  { %1883 = vpow2.f32 %v1367_v34 }
 0x319   :  { %v1882_v36 = vpop.eup %1881 }
 0x31a   :  { %v1319_v37 = vadd.f32 1.0, %v1882_v36 }
 0x31c   :  { %1885 = vrcp.f32 %v1319_v37 }
 0x31d   :  { %v1884_v38 = vpop.eup %1883 }
 0x31e   :  { %v1320_v40 = vadd.f32 1.0, %v1884_v38 }
 0x320   :  { %1887 = vrcp.f32 %v1320_v40 }
 0x326   :  { %v1886_v46 = vpop.eup %1885 }
 0x327   :  { %v1325_v47 = vsub.f32 1.0, %v1886_v46  ;;  %v1329_v48 = vmul.f32 %v1886_v46, %v1197_v44 }
 0x329   :  { %v1327_v50 = vmul.f32 %v1890_v41, %v1325_v47 }
 0x32a   :  { %v1888_v51 = vpop.eup %1887 }
 0x32b   :  { %v1326_v52 = vsub.f32 1.0, %v1888_v51  ;;  %v1330_v53 = vmul.f32 %v1888_v51, %v1198_v49  ;;  %v1331_v57 = vadd.f32 %v1329_v48, %v1327_v50 }
 0x32d   :  { %v1328_v35 = vmul.f32 %v1891_v45, %v1326_v52  ;;  %1333 = vst.msk [vmem:[#allocation5] sm:$0xff] %vm111_vm1, %v1331_v57 }
 0x32f   :  { %v1332_v58 = vadd.f32 %v1330_v53, %v1328_v35 }
 0x331   :  { %1334 = vst.msk [vmem:[#allocation5 + $0x8] sm:$0xff] %vm111_vm1, %v1332_v58 }
 0x332   :  { %1925 = shalt.err (!%p1922_p12)
}
 0x333   :  { %s1926_s14 = scalar_lea.hbm %s2525_s9, 256 }
 0x334   :  { %p1927_p13 = scmp.ne.s32.totalorder %s2525_s9, %s1926_s14  ;;  %p1930_p0 = scmp.lt.u32.totalorder %s1926_s14, %s2525_s9 }
 0x336   :  { %p1932_p1 = pnand %p1930_p0, %p1927_p13 }
 0x338   :  { %1935 = shalt.err (!%p1932_p1)
}
 0x339   :  { %s1945_s5 = smov 128   ;;  %s1946_s19 = smov 8  }
 0x33a   :  { %1346 = dma.vmem_to_hbm [thread:$0]  %s1341_s11, 256, %s2525_s9, [#allocation4], %s1945_s5, %s1945_s5, %s1946_s19  }
 0x33b   :  { %1938 = dma.done.wait [#allocation4], 256  }
 0x33c   :  { %1939 = vsyncadd [#allocation4], 4294967040 }
 0x33d   :  { %1350 = vsyncpa [#allocation3], 1 }
 0x33e   :  { %1351 = vsyncpa [#allocation4], 1 }

</bundles_post_ra>
